<compile_context>
chip_gen: v6e
topology: v6e:2x2x1
jax: 0.10.0
libtpu: 0.0.40
codegen_flags: <defaults>
</compile_context>

<pallas_src>
import numpy as np
import jax
import jax.numpy as jnp
from jax.experimental import pallas as pl
from jax.experimental.pallas import tpu as pltpu

EPS = 1e-5
LANES = 128   # output channels padded to a full lane width (lane-dense stores)
TILE_H = 8    # output rows per grid step (multiple of 8 keeps tiles (8,128)-aligned)


def _round_up(x, m):
    return ((x + m - 1) // m) * m


def _conv_tile(x_ref, w_ref, r0, *, stride, tile_h, wo_p, cin, cp):
    """3x3/stride conv for output rows [r0, r0+tile_h) x cols [0, wo_p).

    x_ref: (stride*stride, 1, Hq, Wq, Cin) bf16 space-to-depth phases of one image.
    w_ref: (3, 3, Cin, cp) bf16 weights (Cout zero-padded to cp lanes).
    Returns f32 (tile_h*wo_p, cp) accumulated over the nine taps on the MXU.
    """
    m = tile_h * wo_p
    acc = jnp.zeros((m, cp), jnp.float32)
    for kh in range(3):
        for kw in range(3):
            ph = (kh % stride) * stride + (kw % stride)   # which phase tensor
            c0 = kw // stride                              # column offset in phase
            tap = x_ref[ph, 0, pl.ds(r0 + kh // stride, tile_h), c0:c0 + wo_p, :]
            acc = acc + jnp.dot(tap.reshape(m, cin), w_ref[kh, kw],
                                preferred_element_type=jnp.float32)
    return acc


def _make_stats_kernel(*, stride, tile_h, ho, ho_pad, wo, wo_p, cin, cp):
    """Pass 1: conv + per-image per-channel (sum, sum of squares) accumulation."""
    need_mask = (ho_pad > ho) or (wo_p > wo)

    def kernel(x_ref, w_ref, stats_ref):
        rb = pl.program_id(1)
        r0 = rb * tile_h
        y = _conv_tile(x_ref, w_ref, r0, stride=stride, tile_h=tile_h,
                       wo_p=wo_p, cin=cin, cp=cp)
        if need_mask:   # exclude padded output rows/cols from the batch statistics
            t = jax.lax.broadcasted_iota(jnp.int32, (tile_h * wo_p, 1), 0)
            valid = jnp.logical_and(r0 + t // wo_p < ho, t % wo_p < wo)
            y = jnp.where(valid, y, 0.0)

        @pl.when(rb == 0)
        def _init():
            stats_ref[...] = jnp.zeros_like(stats_ref)

        stats_ref[0, 0:1, :] = stats_ref[0, 0:1, :] + jnp.sum(y, axis=0, keepdims=True)
        stats_ref[0, 1:2, :] = stats_ref[0, 1:2, :] + jnp.sum(y * y, axis=0,
                                                              keepdims=True)

    return kernel


def _make_norm_kernel(*, stride, tile_h, wo_p, cin, cp):
    """Pass 2: recompute the conv tile and apply the BN affine scale/shift."""

    def kernel(x_ref, w_ref, scale_ref, shift_ref, out_ref):
        rb = pl.program_id(1)
        r0 = rb * tile_h
        y = _conv_tile(x_ref, w_ref, r0, stride=stride, tile_h=tile_h,
                       wo_p=wo_p, cin=cin, cp=cp)
        out_ref[0] = y * scale_ref[...] + shift_ref[...]

    return kernel


def _space_to_depth_phases(x_nhwc, stride, padding, hq, wq):
    """phases[a*stride+b, n, i, j, c] == padded_x[n, a + i*stride, b + j*stride, c].

    Same byte volume as the (padded) input; makes every in-kernel tap a unit-stride
    slice.  Cast to bf16 for the MXU."""
    n, h, w, c = x_nhwc.shape
    hbig, wbig = stride * hq, stride * wq
    xp = jnp.pad(x_nhwc, ((0, 0),
                          (padding, hbig - h - padding),
                          (padding, wbig - w - padding),
                          (0, 0)))
    xp = xp.reshape(n, hq, stride, wq, stride, c)
    phases = jnp.transpose(xp, (2, 4, 0, 1, 3, 5))
    return phases.reshape(stride * stride, n, hq, wq, c).astype(jnp.bfloat16)


def conv_batchnorm_forward(x_nchw, weight, bias, gamma, beta, *, stride, padding):
    """Forward of ConvBatchNorm: BatchNorm2d(train)(Conv2d(3, stride, padding)(x))."""
    del bias  # exact cancellation under training-mode BN mean subtraction
    n, cin, h, w = x_nchw.shape
    cout = weight.shape[0]
    ho = (h + 2 * padding - 3) // stride + 1
    wo = (w + 2 * padding - 3) // stride + 1
    assert ho >= 1 and wo >= 1, "output spatial size must be positive"

    tile_h = TILE_H
    ho_pad = _round_up(ho, tile_h)
    wo_p = _round_up(wo, 8)
    n_rb = ho_pad // tile_h
    cp = _round_up(cout, LANES)
    hq, wq = ho_pad + 2, wo_p + 2
    m_tile = tile_h * wo_p
    s2 = stride * stride

    x_nhwc = jnp.transpose(x_nchw, (0, 2, 3, 1)).astype(jnp.float32)
    phases = _space_to_depth_phases(x_nhwc, stride, padding, hq, wq)

    # (Cout, Cin, KH, KW) -> (KH, KW, Cin, Cout) with Cout zero-padded to 128 lanes.
    wk = jnp.transpose(weight.astype(jnp.float32), (2, 3, 1, 0))
    wk = jnp.pad(wk, ((0, 0), (0, 0), (0, 0), (0, cp - cout))).astype(jnp.bfloat16)

    phase_spec = pl.BlockSpec((s2, 1, hq, wq, cin), lambda i, j: (0, i, 0, 0, 0))
    w_spec = pl.BlockSpec((3, 3, cin, cp), lambda i, j: (0, 0, 0, 0))

    # ---- Pass 1: conv + per-image sum / sum-of-squares ------------------------------
    stats = pl.pallas_call(
        _make_stats_kernel(stride=stride, tile_h=tile_h, ho=ho, ho_pad=ho_pad,
                           wo=wo, wo_p=wo_p, cin=cin, cp=cp),
        grid=(n, n_rb),
        in_specs=[phase_spec, w_spec],
        out_specs=pl.BlockSpec((1, 2, cp), lambda i, j: (i, 0, 0)),
        out_shape=jax.ShapeDtypeStruct((n, 2, cp), jnp.float32),
        compiler_params=pltpu.CompilerParams(
            dimension_semantics=("parallel", "arbitrary")),
    )(phases, wk)

    # ---- Tiny host-side finalize: batch mean / biased var -> affine scale & shift ---
    m_total = n * ho * wo
    tot = jnp.sum(stats, axis=0)                               # (2, cp), f32
    mean = tot[0] / m_total
    var = jnp.maximum(tot[1] / m_total - mean * mean, 0.0)     # biased, one-pass
    inv = jax.lax.rsqrt(var + EPS)
    gamma_p = jnp.pad(gamma.astype(jnp.float32), (0, cp - cout))
    beta_p = jnp.pad(beta.astype(jnp.float32), (0, cp - cout))
    scale = (gamma_p * inv).reshape(1, cp)
    shift = (beta_p - mean * gamma_p * inv).reshape(1, cp)

    # ---- Pass 2: recompute conv tile (no HBM intermediate) and normalize ------------
    out = pl.pallas_call(
        _make_norm_kernel(stride=stride, tile_h=tile_h, wo_p=wo_p, cin=cin, cp=cp),
        grid=(n, n_rb),
        in_specs=[phase_spec, w_spec,
                  pl.BlockSpec((1, cp), lambda i, j: (0, 0)),
                  pl.BlockSpec((1, cp), lambda i, j: (0, 0))],
        out_specs=pl.BlockSpec((1, m_tile, cp), lambda i, j: (i, j, 0)),
        out_shape=jax.ShapeDtypeStruct((n, ho_pad * wo_p, cp), jnp.float32),
        compiler_params=pltpu.CompilerParams(
            dimension_semantics=("parallel", "parallel")),
    )(phases, wk, scale, shift)

    out = out.reshape(n, ho_pad, wo_p, cp)[:, :ho, :wo, :cout]
    return jnp.transpose(out, (0, 3, 1, 2))        # NHWC -> NCHW once, at the boundary


def reference_forward(x_nchw, weight, bias, gamma, beta, *, stride, padding):
    """Pure-JAX reference matching PyTorch ConvBatchNorm.forward (training-mode BN)."""
    x = jnp.transpose(x_nchw, (0, 2, 3, 1))
    y = jax.lax.conv_general_dilated(
        x, jnp.transpose(weight, (2, 3, 1, 0)),
        window_strides=(stride, stride),
        padding=((padding, padding), (padding, padding)),
        dimension_numbers=("NHWC", "HWIO", "NHWC"))
    y = y + bias.reshape(1, 1, 1, -1)
    mean = jnp.mean(y, axis=(0, 1, 2), keepdims=True)
    var = jnp.mean((y - mean) ** 2, axis=(0, 1, 2), keepdims=True)   # biased
    y = gamma.reshape(1, 1, 1, -1) * (y - mean) * jax.lax.rsqrt(var + EPS) \
        + beta.reshape(1, 1, 1, -1)
    return jnp.transpose(y, (0, 3, 1, 2))


if __name__ == "__main__":
    key = jax.random.PRNGKey(0)
    kx, kw_, kb, kg, kbe = jax.random.split(key, 5)

    # ConvBatchNorm(in_channels=3, out_channels=16, stride=2, padding=1)
    N, CIN, H, W = 2, 3, 32, 32
    COUT, STRIDE, PADDING = 16, 2, 1

    x = jax.random.normal(kx, (N, CIN, H, W), dtype=jnp.float32)
    bound = 1.0 / np.sqrt(CIN * 9)                         # nn.Conv2d default init
    weight = jax.random.uniform(kw_, (COUT, CIN, 3, 3), minval=-bound, maxval=bound,
                                dtype=jnp.float32)
    bias = jax.random.uniform(kb, (COUT,), minval=-bound, maxval=bound,
                              dtype=jnp.float32)
    gamma = 1.0 + 0.2 * jax.random.normal(kg, (COUT,), dtype=jnp.float32)
    beta = 0.1 * jax.random.normal(kbe, (COUT,), dtype=jnp.float32)

    out = conv_batchnorm_forward(x, weight, bias, gamma, beta,
                                 stride=STRIDE, padding=PADDING)
    out = jax.block_until_ready(out)

    ref = reference_forward(x, weight, bias, gamma, beta,
                            stride=STRIDE, padding=PADDING)
    HO = (H + 2 * PADDING - 3) // STRIDE + 1
    WO = (W + 2 * PADDING - 3) // STRIDE + 1
    assert out.shape == ref.shape == (N, COUT, HO, WO)
    err = float(jnp.max(jnp.abs(out - ref)))
    if err > 5e-2:
        raise AssertionError(f"Pallas ConvBatchNorm mismatch vs reference: {err:.4f}")
    print("KERNEL_OK")
</pallas_src>

<mosaic_0001>
module attributes {stable_mosaic.version = 11 : i64} {
  func.func @kernel(%arg0: i32, %arg1: i32, %arg2: memref<4x1x18x18x3xbf16, #tpu.memory_space<vmem>>, %arg3: memref<3x3x3x128xbf16, #tpu.memory_space<vmem>>, %arg4: memref<1x2x128xf32, #tpu.memory_space<vmem>>) attributes {dimension_semantics = [#tpu.dimension_semantics<parallel>, #tpu.dimension_semantics<arbitrary>], iteration_bounds = array<i64: 2, 2>, scalar_prefetch = 0 : i64, scratch_operands = 0 : i64, tpu.core_type = #tpu.core_type<tc>, window_params = [{transform_indices = @transform_0, window_bounds = array<i64: 4, 1, 18, 18, 3>}, {pipeline_mode = #tpu.pipeline_mode<synchronous>, transform_indices = @transform_1, window_bounds = array<i64: 3, 3, 3, 128>}, {transform_indices = @transform_2, window_bounds = array<i64: 1, 2, 128>}]} {
    %c8_i32 = arith.constant 8 : i32
    %0 = arith.muli %arg1, %c8_i32 : i32
    %cst = arith.constant 0.000000e+00 : f32
    %1 = vector.broadcast %cst : f32 to vector<128x128xf32>
    %c0_i32 = arith.constant 0 : i32
    %2 = arith.addi %0, %c0_i32 : i32
    %c0 = arith.constant 0 : index
    %c0_0 = arith.constant 0 : index
    %3 = arith.index_cast %2 : i32 to index
    %c0_1 = arith.constant 0 : index
    %c0_2 = arith.constant 0 : index
    %4 = vector.load %arg2[%c0, %c0_0, %3, %c0_1, %c0_2] : memref<4x1x18x18x3xbf16, #tpu.memory_space<vmem>>, vector<1x1x8x16x3xbf16>
    %5 = vector.shape_cast %4 : vector<1x1x8x16x3xbf16> to vector<8x16x3xbf16>
    %6 = vector.shape_cast %5 : vector<8x16x3xbf16> to vector<128x3xbf16>
    %c0_3 = arith.constant 0 : index
    %c0_4 = arith.constant 0 : index
    %c0_5 = arith.constant 0 : index
    %c0_6 = arith.constant 0 : index
    %7 = vector.load %arg3[%c0_3, %c0_4, %c0_5, %c0_6] : memref<3x3x3x128xbf16, #tpu.memory_space<vmem>>, vector<1x1x3x128xbf16>
    %8 = vector.shape_cast %7 : vector<1x1x3x128xbf16> to vector<3x128xbf16>
    %cst_7 = arith.constant dense<0.000000e+00> : vector<128x128xf32>
    %9 = tpu.matmul %6, %8, %cst_7 {dimension_numbers = #tpu.dot_dimension_numbers<[1], [0], [0], [1], [0, 0, 1, 1], [], []>} : vector<128x3xbf16>, vector<3x128xbf16>, vector<128x128xf32> -> vector<128x128xf32>
    %10 = arith.addf %1, %9 : vector<128x128xf32>
    %c0_i32_8 = arith.constant 0 : i32
    %11 = arith.addi %0, %c0_i32_8 : i32
    %c1 = arith.constant 1 : index
    %c0_9 = arith.constant 0 : index
    %12 = arith.index_cast %11 : i32 to index
    %c0_10 = arith.constant 0 : index
    %c0_11 = arith.constant 0 : index
    %13 = vector.load %arg2[%c1, %c0_9, %12, %c0_10, %c0_11] : memref<4x1x18x18x3xbf16, #tpu.memory_space<vmem>>, vector<1x1x8x16x3xbf16>
    %14 = vector.shape_cast %13 : vector<1x1x8x16x3xbf16> to vector<8x16x3xbf16>
    %15 = vector.shape_cast %14 : vector<8x16x3xbf16> to vector<128x3xbf16>
    %c0_12 = arith.constant 0 : index
    %c1_13 = arith.constant 1 : index
    %c0_14 = arith.constant 0 : index
    %c0_15 = arith.constant 0 : index
    %16 = vector.load %arg3[%c0_12, %c1_13, %c0_14, %c0_15] : memref<3x3x3x128xbf16, #tpu.memory_space<vmem>>, vector<1x1x3x128xbf16>
    %17 = vector.shape_cast %16 : vector<1x1x3x128xbf16> to vector<3x128xbf16>
    %cst_16 = arith.constant dense<0.000000e+00> : vector<128x128xf32>
    %18 = tpu.matmul %15, %17, %cst_16 {dimension_numbers = #tpu.dot_dimension_numbers<[1], [0], [0], [1], [0, 0, 1, 1], [], []>} : vector<128x3xbf16>, vector<3x128xbf16>, vector<128x128xf32> -> vector<128x128xf32>
    %19 = arith.addf %10, %18 : vector<128x128xf32>
    %c0_i32_17 = arith.constant 0 : i32
    %20 = arith.addi %0, %c0_i32_17 : i32
    %c0_18 = arith.constant 0 : index
    %c0_19 = arith.constant 0 : index
    %21 = arith.index_cast %20 : i32 to index
    %c1_20 = arith.constant 1 : index
    %c0_21 = arith.constant 0 : index
    %22 = vector.load %arg2[%c0_18, %c0_19, %21, %c1_20, %c0_21] : memref<4x1x18x18x3xbf16, #tpu.memory_space<vmem>>, vector<1x1x8x16x3xbf16>
    %23 = vector.shape_cast %22 : vector<1x1x8x16x3xbf16> to vector<8x16x3xbf16>
    %24 = vector.shape_cast %23 : vector<8x16x3xbf16> to vector<128x3xbf16>
    %c0_22 = arith.constant 0 : index
    %c2 = arith.constant 2 : index
    %c0_23 = arith.constant 0 : index
    %c0_24 = arith.constant 0 : index
    %25 = vector.load %arg3[%c0_22, %c2, %c0_23, %c0_24] : memref<3x3x3x128xbf16, #tpu.memory_space<vmem>>, vector<1x1x3x128xbf16>
    %26 = vector.shape_cast %25 : vector<1x1x3x128xbf16> to vector<3x128xbf16>
    %cst_25 = arith.constant dense<0.000000e+00> : vector<128x128xf32>
    %27 = tpu.matmul %24, %26, %cst_25 {dimension_numbers = #tpu.dot_dimension_numbers<[1], [0], [0], [1], [0, 0, 1, 1], [], []>} : vector<128x3xbf16>, vector<3x128xbf16>, vector<128x128xf32> -> vector<128x128xf32>
    %28 = arith.addf %19, %27 : vector<128x128xf32>
    %c0_i32_26 = arith.constant 0 : i32
    %29 = arith.addi %0, %c0_i32_26 : i32
    %c2_27 = arith.constant 2 : index
    %c0_28 = arith.constant 0 : index
    %30 = arith.index_cast %29 : i32 to index
    %c0_29 = arith.constant 0 : index
    %c0_30 = arith.constant 0 : index
    %31 = vector.load %arg2[%c2_27, %c0_28, %30, %c0_29, %c0_30] : memref<4x1x18x18x3xbf16, #tpu.memory_space<vmem>>, vector<1x1x8x16x3xbf16>
    %32 = vector.shape_cast %31 : vector<1x1x8x16x3xbf16> to vector<8x16x3xbf16>
    %33 = vector.shape_cast %32 : vector<8x16x3xbf16> to vector<128x3xbf16>
    %c1_31 = arith.constant 1 : index
    %c0_32 = arith.constant 0 : index
    %c0_33 = arith.constant 0 : index
    %c0_34 = arith.constant 0 : index
    %34 = vector.load %arg3[%c1_31, %c0_32, %c0_33, %c0_34] : memref<3x3x3x128xbf16, #tpu.memory_space<vmem>>, vector<1x1x3x128xbf16>
    %35 = vector.shape_cast %34 : vector<1x1x3x128xbf16> to vector<3x128xbf16>
    %cst_35 = arith.constant dense<0.000000e+00> : vector<128x128xf32>
    %36 = tpu.matmul %33, %35, %cst_35 {dimension_numbers = #tpu.dot_dimension_numbers<[1], [0], [0], [1], [0, 0, 1, 1], [], []>} : vector<128x3xbf16>, vector<3x128xbf16>, vector<128x128xf32> -> vector<128x128xf32>
    %37 = arith.addf %28, %36 : vector<128x128xf32>
    %c0_i32_36 = arith.constant 0 : i32
    %38 = arith.addi %0, %c0_i32_36 : i32
    %c3 = arith.constant 3 : index
    %c0_37 = arith.constant 0 : index
    %39 = arith.index_cast %38 : i32 to index
    %c0_38 = arith.constant 0 : index
    %c0_39 = arith.constant 0 : index
    %40 = vector.load %arg2[%c3, %c0_37, %39, %c0_38, %c0_39] : memref<4x1x18x18x3xbf16, #tpu.memory_space<vmem>>, vector<1x1x8x16x3xbf16>
    %41 = vector.shape_cast %40 : vector<1x1x8x16x3xbf16> to vector<8x16x3xbf16>
    %42 = vector.shape_cast %41 : vector<8x16x3xbf16> to vector<128x3xbf16>
    %c1_40 = arith.constant 1 : index
    %c1_41 = arith.constant 1 : index
    %c0_42 = arith.constant 0 : index
    %c0_43 = arith.constant 0 : index
    %43 = vector.load %arg3[%c1_40, %c1_41, %c0_42, %c0_43] : memref<3x3x3x128xbf16, #tpu.memory_space<vmem>>, vector<1x1x3x128xbf16>
    %44 = vector.shape_cast %43 : vector<1x1x3x128xbf16> to vector<3x128xbf16>
    %cst_44 = arith.constant dense<0.000000e+00> : vector<128x128xf32>
    %45 = tpu.matmul %42, %44, %cst_44 {dimension_numbers = #tpu.dot_dimension_numbers<[1], [0], [0], [1], [0, 0, 1, 1], [], []>} : vector<128x3xbf16>, vector<3x128xbf16>, vector<128x128xf32> -> vector<128x128xf32>
    %46 = arith.addf %37, %45 : vector<128x128xf32>
    %c0_i32_45 = arith.constant 0 : i32
    %47 = arith.addi %0, %c0_i32_45 : i32
    %c2_46 = arith.constant 2 : index
    %c0_47 = arith.constant 0 : index
    %48 = arith.index_cast %47 : i32 to index
    %c1_48 = arith.constant 1 : index
    %c0_49 = arith.constant 0 : index
    %49 = vector.load %arg2[%c2_46, %c0_47, %48, %c1_48, %c0_49] : memref<4x1x18x18x3xbf16, #tpu.memory_space<vmem>>, vector<1x1x8x16x3xbf16>
    %50 = vector.shape_cast %49 : vector<1x1x8x16x3xbf16> to vector<8x16x3xbf16>
    %51 = vector.shape_cast %50 : vector<8x16x3xbf16> to vector<128x3xbf16>
    %c1_50 = arith.constant 1 : index
    %c2_51 = arith.constant 2 : index
    %c0_52 = arith.constant 0 : index
    %c0_53 = arith.constant 0 : index
    %52 = vector.load %arg3[%c1_50, %c2_51, %c0_52, %c0_53] : memref<3x3x3x128xbf16, #tpu.memory_space<vmem>>, vector<1x1x3x128xbf16>
    %53 = vector.shape_cast %52 : vector<1x1x3x128xbf16> to vector<3x128xbf16>
    %cst_54 = arith.constant dense<0.000000e+00> : vector<128x128xf32>
    %54 = tpu.matmul %51, %53, %cst_54 {dimension_numbers = #tpu.dot_dimension_numbers<[1], [0], [0], [1], [0, 0, 1, 1], [], []>} : vector<128x3xbf16>, vector<3x128xbf16>, vector<128x128xf32> -> vector<128x128xf32>
    %55 = arith.addf %46, %54 : vector<128x128xf32>
    %c1_i32 = arith.constant 1 : i32
    %56 = arith.addi %0, %c1_i32 : i32
    %c0_55 = arith.constant 0 : index
    %c0_56 = arith.constant 0 : index
    %57 = arith.index_cast %56 : i32 to index
    %c0_57 = arith.constant 0 : index
    %c0_58 = arith.constant 0 : index
    %58 = vector.load %arg2[%c0_55, %c0_56, %57, %c0_57, %c0_58] : memref<4x1x18x18x3xbf16, #tpu.memory_space<vmem>>, vector<1x1x8x16x3xbf16>
    %59 = vector.shape_cast %58 : vector<1x1x8x16x3xbf16> to vector<8x16x3xbf16>
    %60 = vector.shape_cast %59 : vector<8x16x3xbf16> to vector<128x3xbf16>
    %c2_59 = arith.constant 2 : index
    %c0_60 = arith.constant 0 : index
    %c0_61 = arith.constant 0 : index
    %c0_62 = arith.constant 0 : index
    %61 = vector.load %arg3[%c2_59, %c0_60, %c0_61, %c0_62] : memref<3x3x3x128xbf16, #tpu.memory_space<vmem>>, vector<1x1x3x128xbf16>
    %62 = vector.shape_cast %61 : vector<1x1x3x128xbf16> to vector<3x128xbf16>
    %cst_63 = arith.constant dense<0.000000e+00> : vector<128x128xf32>
    %63 = tpu.matmul %60, %62, %cst_63 {dimension_numbers = #tpu.dot_dimension_numbers<[1], [0], [0], [1], [0, 0, 1, 1], [], []>} : vector<128x3xbf16>, vector<3x128xbf16>, vector<128x128xf32> -> vector<128x128xf32>
    %64 = arith.addf %55, %63 : vector<128x128xf32>
    %c1_i32_64 = arith.constant 1 : i32
    %65 = arith.addi %0, %c1_i32_64 : i32
    %c1_65 = arith.constant 1 : index
    %c0_66 = arith.constant 0 : index
    %66 = arith.index_cast %65 : i32 to index
    %c0_67 = arith.constant 0 : index
    %c0_68 = arith.constant 0 : index
    %67 = vector.load %arg2[%c1_65, %c0_66, %66, %c0_67, %c0_68] : memref<4x1x18x18x3xbf16, #tpu.memory_space<vmem>>, vector<1x1x8x16x3xbf16>
    %68 = vector.shape_cast %67 : vector<1x1x8x16x3xbf16> to vector<8x16x3xbf16>
    %69 = vector.shape_cast %68 : vector<8x16x3xbf16> to vector<128x3xbf16>
    %c2_69 = arith.constant 2 : index
    %c1_70 = arith.constant 1 : index
    %c0_71 = arith.constant 0 : index
    %c0_72 = arith.constant 0 : index
    %70 = vector.load %arg3[%c2_69, %c1_70, %c0_71, %c0_72] : memref<3x3x3x128xbf16, #tpu.memory_space<vmem>>, vector<1x1x3x128xbf16>
    %71 = vector.shape_cast %70 : vector<1x1x3x128xbf16> to vector<3x128xbf16>
    %cst_73 = arith.constant dense<0.000000e+00> : vector<128x128xf32>
    %72 = tpu.matmul %69, %71, %cst_73 {dimension_numbers = #tpu.dot_dimension_numbers<[1], [0], [0], [1], [0, 0, 1, 1], [], []>} : vector<128x3xbf16>, vector<3x128xbf16>, vector<128x128xf32> -> vector<128x128xf32>
    %73 = arith.addf %64, %72 : vector<128x128xf32>
    %c1_i32_74 = arith.constant 1 : i32
    %74 = arith.addi %0, %c1_i32_74 : i32
    %c0_75 = arith.constant 0 : index
    %c0_76 = arith.constant 0 : index
    %75 = arith.index_cast %74 : i32 to index
    %c1_77 = arith.constant 1 : index
    %c0_78 = arith.constant 0 : index
    %76 = vector.load %arg2[%c0_75, %c0_76, %75, %c1_77, %c0_78] : memref<4x1x18x18x3xbf16, #tpu.memory_space<vmem>>, vector<1x1x8x16x3xbf16>
    %77 = vector.shape_cast %76 : vector<1x1x8x16x3xbf16> to vector<8x16x3xbf16>
    %78 = vector.shape_cast %77 : vector<8x16x3xbf16> to vector<128x3xbf16>
    %c2_79 = arith.constant 2 : index
    %c2_80 = arith.constant 2 : index
    %c0_81 = arith.constant 0 : index
    %c0_82 = arith.constant 0 : index
    %79 = vector.load %arg3[%c2_79, %c2_80, %c0_81, %c0_82] : memref<3x3x3x128xbf16, #tpu.memory_space<vmem>>, vector<1x1x3x128xbf16>
    %80 = vector.shape_cast %79 : vector<1x1x3x128xbf16> to vector<3x128xbf16>
    %cst_83 = arith.constant dense<0.000000e+00> : vector<128x128xf32>
    %81 = tpu.matmul %78, %80, %cst_83 {dimension_numbers = #tpu.dot_dimension_numbers<[1], [0], [0], [1], [0, 0, 1, 1], [], []>} : vector<128x3xbf16>, vector<3x128xbf16>, vector<128x128xf32> -> vector<128x128xf32>
    %82 = arith.addf %73, %81 : vector<128x128xf32>
    %c0_i32_84 = arith.constant 0 : i32
    %83 = arith.cmpi eq, %arg1, %c0_i32_84 : i32
    %84 = arith.extui %83 : i1 to i32
    %c0_i32_85 = arith.constant 0 : i32
    %85 = arith.cmpi ne, %84, %c0_i32_85 : i32
    scf.if %85 {
      %cst_100 = arith.constant 0.000000e+00 : f32
      %103 = vector.broadcast %cst_100 : f32 to vector<1x2x128xf32>
      %c0_101 = arith.constant 0 : index
      %c0_102 = arith.constant 0 : index
      %c0_103 = arith.constant 0 : index
      %104 = vector.load %arg4[%c0_101, %c0_102, %c0_103] : memref<1x2x128xf32, #tpu.memory_space<vmem>>, vector<1x2x128xf32>
      tpu.vector_store %arg4[%c0_101, %c0_102, %c0_103], %103 {strides = array<i32>} : memref<1x2x128xf32, #tpu.memory_space<vmem>>, vector<1x2x128xf32>,
    } else {
    }
    %c0_86 = arith.constant 0 : index
    %c0_87 = arith.constant 0 : index
    %c0_88 = arith.constant 0 : index
    %86 = vector.load %arg4[%c0_86, %c0_87, %c0_88] : memref<1x2x128xf32, #tpu.memory_space<vmem>>, vector<1x1x128xf32>
    %87 = vector.shape_cast %86 : vector<1x1x128xf32> to vector<1x128xf32>
    %cst_89 = arith.constant dense<0.000000e+00> : vector<128xf32>
    %88 = vector.multi_reduction <add>, %82, %cst_89 [0] : vector<128x128xf32> to vector<128xf32>
    %89 = vector.shape_cast %88 : vector<128xf32> to vector<1x128xf32>
    %90 = arith.addf %87, %89 : vector<1x128xf32>
    %c0_90 = arith.constant 0 : index
    %c0_91 = arith.constant 0 : index
    %c0_92 = arith.constant 0 : index
    %91 = vector.load %arg4[%c0_90, %c0_91, %c0_92] : memref<1x2x128xf32, #tpu.memory_space<vmem>>, vector<1x1x128xf32>
    %92 = vector.shape_cast %91 : vector<1x1x128xf32> to vector<1x128xf32>
    %93 = vector.shape_cast %90 : vector<1x128xf32> to vector<1x1x128xf32>
    tpu.vector_store %arg4[%c0_90, %c0_91, %c0_92], %93 {strides = array<i32>} : memref<1x2x128xf32, #tpu.memory_space<vmem>>, vector<1x1x128xf32>,
    %c0_93 = arith.constant 0 : index
    %c1_94 = arith.constant 1 : index
    %c0_95 = arith.constant 0 : index
    %94 = vector.load %arg4[%c0_93, %c1_94, %c0_95] : memref<1x2x128xf32, #tpu.memory_space<vmem>>, vector<1x1x128xf32>
    %95 = vector.shape_cast %94 : vector<1x1x128xf32> to vector<1x128xf32>
    %96 = arith.mulf %82, %82 : vector<128x128xf32>
    %cst_96 = arith.constant dense<0.000000e+00> : vector<128xf32>
    %97 = vector.multi_reduction <add>, %96, %cst_96 [0] : vector<128x128xf32> to vector<128xf32>
    %98 = vector.shape_cast %97 : vector<128xf32> to vector<1x128xf32>
    %99 = arith.addf %95, %98 : vector<1x128xf32>
    %c0_97 = arith.constant 0 : index
    %c1_98 = arith.constant 1 : index
    %c0_99 = arith.constant 0 : index
    %100 = vector.load %arg4[%c0_97, %c1_98, %c0_99] : memref<1x2x128xf32, #tpu.memory_space<vmem>>, vector<1x1x128xf32>
    %101 = vector.shape_cast %100 : vector<1x1x128xf32> to vector<1x128xf32>
    %102 = vector.shape_cast %99 : vector<1x128xf32> to vector<1x1x128xf32>
    tpu.vector_store %arg4[%c0_97, %c1_98, %c0_99], %102 {strides = array<i32>} : memref<1x2x128xf32, #tpu.memory_space<vmem>>, vector<1x1x128xf32>,
    return
  }
  func.func @transform_0(%arg0: i32, %arg1: i32) -> (i32, i32, i32, i32, i32) {
    %c0_i32 = arith.constant 0 : i32
    %c0_i32_0 = arith.constant 0 : i32
    %c0_i32_1 = arith.constant 0 : i32
    %c0_i32_2 = arith.constant 0 : i32
    %c0_i32_3 = arith.constant 0 : i32
    return %c0_i32, %arg0, %c0_i32_0, %c0_i32_1, %c0_i32_2 : i32, i32, i32, i32, i32
  }
  func.func @transform_1(%arg0: i32, %arg1: i32) -> (i32, i32, i32, i32) {
    %c0_i32 = arith.constant 0 : i32
    %c0_i32_0 = arith.constant 0 : i32
    %c0_i32_1 = arith.constant 0 : i32
    %c0_i32_2 = arith.constant 0 : i32
    %c0_i32_3 = arith.constant 0 : i32
    return %c0_i32, %c0_i32_0, %c0_i32_1, %c0_i32_2 : i32, i32, i32, i32
  }
  func.func @transform_2(%arg0: i32, %arg1: i32) -> (i32, i32, i32) {
    %c0_i32 = arith.constant 0 : i32
    %c0_i32_0 = arith.constant 0 : i32
    %c0_i32_1 = arith.constant 0 : i32
    return %arg0, %c0_i32, %c0_i32_0 : i32, i32, i32
  }
}

</mosaic_0001>

<bundles_post_ra>
// kernel: tpu_custom_call.1
= control target key start
LH: loop header
LB: loop body
LE: loop exit
PB: predicated region body
PF: predicated region fallthrough
CT: control target
= control target key end

     0   :  { %7 = vsyncpa [#allocation4], 0  ;;  %s5288_s0 = inlined_call_operand.vmem [shape: bf16[4,2,18,18,3], index: 0, kind: input, shape index: {}]   ;;  %s5289_s1 = inlined_call_operand.vmem [shape: bf16[3,3,3,128], index: 1, kind: input, shape index: {}]   ;;  %s5290_s2 = inlined_call_operand.hbm [shape: f32[2,2,128], index: 2, kind: output, shape index: {}]  }
   0x1   :  { %9 = vsyncpa [#allocation4 + $0x1], 0  ;;  %s4355_s9 = smov 0   ;;  %s4357_s10 = smov 0  }
   0x2   :  { %s4359_s11 = smov 0   ;;  %s4361_s12 = smov 0  }
   0x3   :  { %s4363_s13 = smov 0   ;;  %s4365_s14 = smov 0  }
   0x4   :  { %s4367_s15 = smov 0   ;;  %s4369_s16 = smov 0  }
   0x5 LB: > { %s3570_s17 = sadd.s32 4294967295, %s4335_s16   ;;  %s3571_s18 = sadd.s32 4294967294, %s4335_s16   ;;  %s4335_s16 = sphi %s4369_s16, %s15_s16   ;;  %s4331_s15 = sphi %s4367_s15, %s5310_s15   ;;  %s4327_s14 = sphi %s4365_s14, %s5309_s14   ;;  %s4323_s13 = sphi %s4363_s13, %s5308_s13   ;;  %s4319_s12 = sphi %s4361_s12, %s5307_s12   ;;  %s4315_s11 = sphi %s4359_s11, %s5306_s11   ;;  %s4311_s10 = sphi %s4357_s10, %s5305_s10   ;;  %s4307_s9 = sphi %s4355_s9, %s5304_s9  }
   0x6   : > { %s24_s19 = sadd.s32 1, %s4327_s14  ;;  %s27_s20 = sadd.s32 1, %s4331_s15 }
   0x7   : > { %p25_p0 = scmp.ge.s32.totalorder %s24_s19, 2  ;;  %p41_p1 = scmp.ne.s32.totalorder %s4315_s11, %s4311_s10 }
   0x8   : > { %p42_p2 = scmp.eq.s32.totalorder %s4335_s16, 0  ;;  %p92_p4 = scmp.eq.s32.totalorder %s3570_s17, 3 }
   0x9   : > { %s5312_s19 = smov (%p25_p0, %s24_s19), 0  ;;  %s5314_s20 = smov (!%p25_p0, %s27_s20), %s4331_s15 }
   0xa   : > { %p4405_p3 = por %p42_p2, %p41_p1  ;;  %p29_p5 = scmp.ge.s32.totalorder %s5314_s20, 2 }
   0xb   : > { %p97_p6 = scmp.ne.s32.totalorder %s4311_s10, %s4307_s9  ;;  %p4411_p7 = por %p92_p4, %p41_p1 }
   0xc   : > { %p98_p8 = scmp.eq.s32.totalorder %s3571_s18, 3  ;;  %s5316_s20 = smov (%p29_p5, %s5314_s20), 0 }
   0xd   : > { %s31_s24 = ssub.s32 %s4331_s15, %s5316_s20  ;;  %s34_s25 = sadd.s32 1, %s4315_s11 }
   0xe   : > { %p4417_p9 = por %p98_p8, %p97_p6  ;;  %p32_p10 = scmp.eq.s32.totalorder %s31_s24, 0 }
   0xf   : > { %p3573_p11 = scmp.ge.s32.totalorder %s4335_s16, 4 }
  0x10   : > { %s4425_s26 = scalar_select %p32_p10, %s4315_s11, %s34_s25  }
  0x11   : > { %117 = sbr.rel (%p3573_p11) target bundleno = 81 (0x51), region = 20 }
  0x16   : > { %120 = sbr.rel (!%p4405_p3) target bundleno = 81 (0x51), region = 24  ;;  %s122_s27 = sand.u32 (%p4405_p3), 1, %s4315_s11  }
  0x17   : > { %s4120_s28 = smul.u32 (%p4405_p3), 216, %s4331_s15 }
  0x18   : > { %s4119_s29 = smul.u32 (%p4405_p3), 864, %s122_s27 }
  0x19   : > { %s4435_s4 = scalar_lea.vmem (%p4405_p3), %s5288_s0, %s4120_s28 }
  0x1a   : > { %v144_v0 = vld [vmem:[%s4435_s4] sm:$0xff] (%p4405_p3)   ;;  %v148_v1 = vld [vmem:[%s4435_s4 + $0x8] sm:$0xff] (%p4405_p3)   ;;  %v152_v2 = vld [vmem:[%s4435_s4 + $0x10] sm:$0xff] (%p4405_p3)   ;;  %s4440_s5 = scalar_lea.vmem (%p4405_p3), [#allocation2], %s4119_s29 }
  0x1b   : > { %145 = vst [vmem:[%s4440_s5] sm:$0xff] %v144_v0   ;;  %149 = vst [vmem:[%s4440_s5 + $0x8] sm:$0xff] %v148_v1   ;;  %v156_v3 = vld [vmem:[%s4435_s4 + $0x18] sm:$0xff]   ;;  %v160_v4 = vld [vmem:[%s4435_s4 + $0x20] sm:$0xff]  }
  0x1c   : > { %153 = vst [vmem:[%s4440_s5 + $0x10] sm:$0xff] %v152_v2   ;;  %v164_v5 = vld [vmem:[%s4435_s4 + $0x28] sm:$0xff]   ;;  %157 = vst [vmem:[%s4440_s5 + $0x18] sm:$0xff] %v156_v3   ;;  %v168_v6 = vld [vmem:[%s4435_s4 + $0x30] sm:$0xff]  }
  0x1d   : > { %161 = vst [vmem:[%s4440_s5 + $0x20] sm:$0xff] %v160_v4   ;;  %165 = vst [vmem:[%s4440_s5 + $0x28] sm:$0xff] %v164_v5   ;;  %v172_v7 = vld [vmem:[%s4435_s4 + $0x38] sm:$0xff]   ;;  %v176_v8 = vld [vmem:[%s4435_s4 + $0x40] sm:$0xff]  }
  0x1e   : > { %169 = vst [vmem:[%s4440_s5 + $0x30] sm:$0xff] %v168_v6   ;;  %173 = vst [vmem:[%s4440_s5 + $0x38] sm:$0xff] %v172_v7   ;;  %v180_v9 = vld [vmem:[%s4435_s4 + $0x48] sm:$0xff]   ;;  %v184_v10 = vld [vmem:[%s4435_s4 + $0x50] sm:$0xff]  }
  0x1f   : > { %177 = vst [vmem:[%s4440_s5 + $0x40] sm:$0xff] %v176_v8   ;;  %v188_v11 = vld [vmem:[%s4435_s4 + $0x58] sm:$0xff]   ;;  %181 = vst [vmem:[%s4440_s5 + $0x48] sm:$0xff] %v180_v9   ;;  %v192_v12 = vld [vmem:[%s4435_s4 + $0x60] sm:$0xff]  }
  0x20   : > { %185 = vst [vmem:[%s4440_s5 + $0x50] sm:$0xff] %v184_v10   ;;  %189 = vst [vmem:[%s4440_s5 + $0x58] sm:$0xff] %v188_v11   ;;  %v196_v13 = vld [vmem:[%s4435_s4 + $0x68] sm:$0xff]   ;;  %v200_v14 = vld [vmem:[%s4435_s4 + $0x70] sm:$0xff]  }
  0x21   : > { %193 = vst [vmem:[%s4440_s5 + $0x60] sm:$0xff] %v192_v12   ;;  %197 = vst [vmem:[%s4440_s5 + $0x68] sm:$0xff] %v196_v13   ;;  %v204_v15 = vld [vmem:[%s4435_s4 + $0x78] sm:$0xff]   ;;  %v208_v16 = vld [vmem:[%s4435_s4 + $0x80] sm:$0xff]  }
  0x22   : > { %201 = vst [vmem:[%s4440_s5 + $0x70] sm:$0xff] %v200_v14   ;;  %v212_v17 = vld [vmem:[%s4435_s4 + $0x88] sm:$0xff]   ;;  %205 = vst [vmem:[%s4440_s5 + $0x78] sm:$0xff] %v204_v15   ;;  %v216_v18 = vld [vmem:[%s4435_s4 + $0x90] sm:$0xff]  }
  0x23   : > { %209 = vst [vmem:[%s4440_s5 + $0x80] sm:$0xff] %v208_v16   ;;  %213 = vst [vmem:[%s4440_s5 + $0x88] sm:$0xff] %v212_v17   ;;  %v220_v19 = vld [vmem:[%s4435_s4 + $0x98] sm:$0xff]   ;;  %v224_v20 = vld [vmem:[%s4435_s4 + $0xa0] sm:$0xff]  }
  0x24   : > { %217 = vst [vmem:[%s4440_s5 + $0x90] sm:$0xff] %v216_v18   ;;  %221 = vst [vmem:[%s4440_s5 + $0x98] sm:$0xff] %v220_v19   ;;  %v228_v21 = vld [vmem:[%s4435_s4 + $0xa8] sm:$0xff]   ;;  %v232_v22 = vld [vmem:[%s4435_s4 + $0xb0] sm:$0xff]  }
  0x25   : > { %225 = vst [vmem:[%s4440_s5 + $0xa0] sm:$0xff] %v224_v20   ;;  %v236_v23 = vld [vmem:[%s4435_s4 + $0xb8] sm:$0xff]   ;;  %229 = vst [vmem:[%s4440_s5 + $0xa8] sm:$0xff] %v228_v21   ;;  %v240_v24 = vld [vmem:[%s4435_s4 + $0xc0] sm:$0xff]  }
  0x26   : > { %233 = vst [vmem:[%s4440_s5 + $0xb0] sm:$0xff] %v232_v22   ;;  %237 = vst [vmem:[%s4440_s5 + $0xb8] sm:$0xff] %v236_v23   ;;  %v244_v25 = vld [vmem:[%s4435_s4 + $0xc8] sm:$0xff]   ;;  %v248_v26 = vld [vmem:[%s4435_s4 + $0xd0] sm:$0xff]  }
  0x27   : > { %241 = vst [vmem:[%s4440_s5 + $0xc0] sm:$0xff] %v240_v24   ;;  %245 = vst [vmem:[%s4440_s5 + $0xc8] sm:$0xff] %v244_v25   ;;  %v252_v27 = vld [vmem:[%s4435_s4 + $0x1b0] sm:$0xff]   ;;  %v256_v28 = vld [vmem:[%s4435_s4 + $0x1b8] sm:$0xff]  }
  0x28   : > { %249 = vst [vmem:[%s4440_s5 + $0xd0] sm:$0xff] %v248_v26   ;;  %v260_v29 = vld [vmem:[%s4435_s4 + $0x1c0] sm:$0xff]   ;;  %253 = vst [vmem:[%s4440_s5 + $0xd8] sm:$0xff] %v252_v27   ;;  %v264_v30 = vld [vmem:[%s4435_s4 + $0x1c8] sm:$0xff]  }
  0x29   : > { %257 = vst [vmem:[%s4440_s5 + $0xe0] sm:$0xff] %v256_v28   ;;  %261 = vst [vmem:[%s4440_s5 + $0xe8] sm:$0xff] %v260_v29   ;;  %v268_v31 = vld [vmem:[%s4435_s4 + $0x1d0] sm:$0xff]   ;;  %v272_v32 = vld [vmem:[%s4435_s4 + $0x1d8] sm:$0xff]  }
  0x2a   : > { %265 = vst [vmem:[%s4440_s5 + $0xf0] sm:$0xff] %v264_v30   ;;  %269 = vst [vmem:[%s4440_s5 + $0xf8] sm:$0xff] %v268_v31   ;;  %v276_v33 = vld [vmem:[%s4435_s4 + $0x1e0] sm:$0xff]   ;;  %v280_v34 = vld [vmem:[%s4435_s4 + $0x1e8] sm:$0xff]  }
  0x2b   : > { %273 = vst [vmem:[%s4440_s5 + $0x100] sm:$0xff] %v272_v32   ;;  %v284_v35 = vld [vmem:[%s4435_s4 + $0x1f0] sm:$0xff]   ;;  %277 = vst [vmem:[%s4440_s5 + $0x108] sm:$0xff] %v276_v33   ;;  %v288_v36 = vld [vmem:[%s4435_s4 + $0x1f8] sm:$0xff]  }
  0x2c   : > { %281 = vst [vmem:[%s4440_s5 + $0x110] sm:$0xff] %v280_v34   ;;  %285 = vst [vmem:[%s4440_s5 + $0x118] sm:$0xff] %v284_v35   ;;  %v292_v37 = vld [vmem:[%s4435_s4 + $0x200] sm:$0xff]   ;;  %v296_v38 = vld [vmem:[%s4435_s4 + $0x208] sm:$0xff]  }
  0x2d   : > { %289 = vst [vmem:[%s4440_s5 + $0x120] sm:$0xff] %v288_v36   ;;  %293 = vst [vmem:[%s4440_s5 + $0x128] sm:$0xff] %v292_v37   ;;  %v300_v39 = vld [vmem:[%s4435_s4 + $0x210] sm:$0xff]   ;;  %v304_v40 = vld [vmem:[%s4435_s4 + $0x218] sm:$0xff]  }
  0x2e   : > { %297 = vst [vmem:[%s4440_s5 + $0x130] sm:$0xff] %v296_v38   ;;  %v308_v41 = vld [vmem:[%s4435_s4 + $0x220] sm:$0xff]   ;;  %301 = vst [vmem:[%s4440_s5 + $0x138] sm:$0xff] %v300_v39   ;;  %v312_v42 = vld [vmem:[%s4435_s4 + $0x228] sm:$0xff]  }
  0x2f   : > { %305 = vst [vmem:[%s4440_s5 + $0x140] sm:$0xff] %v304_v40   ;;  %309 = vst [vmem:[%s4440_s5 + $0x148] sm:$0xff] %v308_v41   ;;  %v316_v43 = vld [vmem:[%s4435_s4 + $0x230] sm:$0xff]   ;;  %v320_v44 = vld [vmem:[%s4435_s4 + $0x238] sm:$0xff]  }
  0x30   : > { %313 = vst [vmem:[%s4440_s5 + $0x150] sm:$0xff] %v312_v42   ;;  %317 = vst [vmem:[%s4440_s5 + $0x158] sm:$0xff] %v316_v43   ;;  %v324_v45 = vld [vmem:[%s4435_s4 + $0x240] sm:$0xff]   ;;  %v328_v46 = vld [vmem:[%s4435_s4 + $0x248] sm:$0xff]  }
  0x31   : > { %321 = vst [vmem:[%s4440_s5 + $0x160] sm:$0xff] %v320_v44   ;;  %v332_v47 = vld [vmem:[%s4435_s4 + $0x250] sm:$0xff]   ;;  %325 = vst [vmem:[%s4440_s5 + $0x168] sm:$0xff] %v324_v45   ;;  %v336_v48 = vld [vmem:[%s4435_s4 + $0x258] sm:$0xff]  }
  0x32   : > { %329 = vst [vmem:[%s4440_s5 + $0x170] sm:$0xff] %v328_v46   ;;  %333 = vst [vmem:[%s4440_s5 + $0x178] sm:$0xff] %v332_v47   ;;  %v340_v49 = vld [vmem:[%s4435_s4 + $0x260] sm:$0xff]   ;;  %v344_v50 = vld [vmem:[%s4435_s4 + $0x268] sm:$0xff]  }
  0x33   : > { %337 = vst [vmem:[%s4440_s5 + $0x180] sm:$0xff] %v336_v48   ;;  %341 = vst [vmem:[%s4440_s5 + $0x188] sm:$0xff] %v340_v49   ;;  %v348_v51 = vld [vmem:[%s4435_s4 + $0x270] sm:$0xff]   ;;  %v352_v52 = vld [vmem:[%s4435_s4 + $0x278] sm:$0xff]  }
  0x34   : > { %345 = vst [vmem:[%s4440_s5 + $0x190] sm:$0xff] %v344_v50   ;;  %v356_v53 = vld [vmem:[%s4435_s4 + $0x280] sm:$0xff]   ;;  %349 = vst [vmem:[%s4440_s5 + $0x198] sm:$0xff] %v348_v51   ;;  %v364_v55 = vld [vmem:[%s4435_s4 + $0x368] sm:$0xff]  }
  0x35   : > { %353 = vst [vmem:[%s4440_s5 + $0x1a0] sm:$0xff] %v352_v52   ;;  %357 = vst [vmem:[%s4440_s5 + $0x1a8] sm:$0xff] %v356_v53   ;;  %v360_v54 = vld [vmem:[%s4435_s4 + $0x360] sm:$0xff]   ;;  %v368_v56 = vld [vmem:[%s4435_s4 + $0x370] sm:$0xff]  }
  0x36   : > { %361 = vst [vmem:[%s4440_s5 + $0x1b0] sm:$0xff] %v360_v54   ;;  %365 = vst [vmem:[%s4440_s5 + $0x1b8] sm:$0xff] %v364_v55   ;;  %v372_v57 = vld [vmem:[%s4435_s4 + $0x378] sm:$0xff]   ;;  %v376_v58 = vld [vmem:[%s4435_s4 + $0x380] sm:$0xff]  }
  0x37   : > { %369 = vst [vmem:[%s4440_s5 + $0x1c0] sm:$0xff] %v368_v56   ;;  %v380_v59 = vld [vmem:[%s4435_s4 + $0x388] sm:$0xff]   ;;  %373 = vst [vmem:[%s4440_s5 + $0x1c8] sm:$0xff] %v372_v57   ;;  %v384_v60 = vld [vmem:[%s4435_s4 + $0x390] sm:$0xff]  }
  0x38   : > { %377 = vst [vmem:[%s4440_s5 + $0x1d0] sm:$0xff] %v376_v58   ;;  %381 = vst [vmem:[%s4440_s5 + $0x1d8] sm:$0xff] %v380_v59   ;;  %v388_v61 = vld [vmem:[%s4435_s4 + $0x398] sm:$0xff]   ;;  %v392_v62 = vld [vmem:[%s4435_s4 + $0x3a0] sm:$0xff]  }
  0x39   : > { %385 = vst [vmem:[%s4440_s5 + $0x1e0] sm:$0xff] %v384_v60   ;;  %389 = vst [vmem:[%s4440_s5 + $0x1e8] sm:$0xff] %v388_v61   ;;  %v396_v63 = vld [vmem:[%s4435_s4 + $0x3a8] sm:$0xff]   ;;  %v400_v0 = vld [vmem:[%s4435_s4 + $0x3b0] sm:$0xff]  }
  0x3a   : > { %393 = vst [vmem:[%s4440_s5 + $0x1f0] sm:$0xff] %v392_v62   ;;  %v404_v1 = vld [vmem:[%s4435_s4 + $0x3b8] sm:$0xff]   ;;  %397 = vst [vmem:[%s4440_s5 + $0x1f8] sm:$0xff] %v396_v63   ;;  %v408_v2 = vld [vmem:[%s4435_s4 + $0x3c0] sm:$0xff]  }
  0x3b   : > { %401 = vst [vmem:[%s4440_s5 + $0x200] sm:$0xff] %v400_v0   ;;  %405 = vst [vmem:[%s4440_s5 + $0x208] sm:$0xff] %v404_v1   ;;  %v412_v3 = vld [vmem:[%s4435_s4 + $0x3c8] sm:$0xff]   ;;  %v416_v4 = vld [vmem:[%s4435_s4 + $0x3d0] sm:$0xff]  }
  0x3c   : > { %409 = vst [vmem:[%s4440_s5 + $0x210] sm:$0xff] %v408_v2   ;;  %413 = vst [vmem:[%s4440_s5 + $0x218] sm:$0xff] %v412_v3   ;;  %v420_v5 = vld [vmem:[%s4435_s4 + $0x3d8] sm:$0xff]   ;;  %v424_v6 = vld [vmem:[%s4435_s4 + $0x3e0] sm:$0xff]  }
  0x3d   : > { %417 = vst [vmem:[%s4440_s5 + $0x220] sm:$0xff] %v416_v4   ;;  %v428_v7 = vld [vmem:[%s4435_s4 + $0x3e8] sm:$0xff]   ;;  %421 = vst [vmem:[%s4440_s5 + $0x228] sm:$0xff] %v420_v5   ;;  %v432_v8 = vld [vmem:[%s4435_s4 + $0x3f0] sm:$0xff]  }
  0x3e   : > { %425 = vst [vmem:[%s4440_s5 + $0x230] sm:$0xff] %v424_v6   ;;  %429 = vst [vmem:[%s4440_s5 + $0x238] sm:$0xff] %v428_v7   ;;  %v436_v9 = vld [vmem:[%s4435_s4 + $0x3f8] sm:$0xff]   ;;  %v440_v10 = vld [vmem:[%s4435_s4 + $0x400] sm:$0xff]  }
  0x3f   : > { %433 = vst [vmem:[%s4440_s5 + $0x240] sm:$0xff] %v432_v8   ;;  %437 = vst [vmem:[%s4440_s5 + $0x248] sm:$0xff] %v436_v9   ;;  %v444_v11 = vld [vmem:[%s4435_s4 + $0x408] sm:$0xff]   ;;  %v448_v12 = vld [vmem:[%s4435_s4 + $0x410] sm:$0xff]  }
  0x40   : > { %441 = vst [vmem:[%s4440_s5 + $0x250] sm:$0xff] %v440_v10   ;;  %v452_v13 = vld [vmem:[%s4435_s4 + $0x418] sm:$0xff]   ;;  %445 = vst [vmem:[%s4440_s5 + $0x258] sm:$0xff] %v444_v11   ;;  %v456_v14 = vld [vmem:[%s4435_s4 + $0x420] sm:$0xff]  }
  0x41   : > { %449 = vst [vmem:[%s4440_s5 + $0x260] sm:$0xff] %v448_v12   ;;  %453 = vst [vmem:[%s4440_s5 + $0x268] sm:$0xff] %v452_v13   ;;  %v460_v15 = vld [vmem:[%s4435_s4 + $0x428] sm:$0xff]   ;;  %v464_v16 = vld [vmem:[%s4435_s4 + $0x430] sm:$0xff]  }
  0x42   : > { %457 = vst [vmem:[%s4440_s5 + $0x270] sm:$0xff] %v456_v14   ;;  %461 = vst [vmem:[%s4440_s5 + $0x278] sm:$0xff] %v460_v15   ;;  %v468_v17 = vld [vmem:[%s4435_s4 + $0x510] sm:$0xff]   ;;  %v472_v18 = vld [vmem:[%s4435_s4 + $0x518] sm:$0xff]  }
  0x43   : > { %465 = vst [vmem:[%s4440_s5 + $0x280] sm:$0xff] %v464_v16   ;;  %v476_v19 = vld [vmem:[%s4435_s4 + $0x520] sm:$0xff]   ;;  %469 = vst [vmem:[%s4440_s5 + $0x288] sm:$0xff] %v468_v17   ;;  %v480_v20 = vld [vmem:[%s4435_s4 + $0x528] sm:$0xff]  }
  0x44   : > { %473 = vst [vmem:[%s4440_s5 + $0x290] sm:$0xff] %v472_v18   ;;  %477 = vst [vmem:[%s4440_s5 + $0x298] sm:$0xff] %v476_v19   ;;  %v484_v21 = vld [vmem:[%s4435_s4 + $0x530] sm:$0xff]   ;;  %v488_v22 = vld [vmem:[%s4435_s4 + $0x538] sm:$0xff]  }
  0x45   : > { %481 = vst [vmem:[%s4440_s5 + $0x2a0] sm:$0xff] %v480_v20   ;;  %485 = vst [vmem:[%s4440_s5 + $0x2a8] sm:$0xff] %v484_v21   ;;  %v492_v23 = vld [vmem:[%s4435_s4 + $0x540] sm:$0xff]   ;;  %v496_v24 = vld [vmem:[%s4435_s4 + $0x548] sm:$0xff]  }
  0x46   : > { %489 = vst [vmem:[%s4440_s5 + $0x2b0] sm:$0xff] %v488_v22   ;;  %v500_v25 = vld [vmem:[%s4435_s4 + $0x550] sm:$0xff]   ;;  %493 = vst [vmem:[%s4440_s5 + $0x2b8] sm:$0xff] %v492_v23   ;;  %v504_v26 = vld [vmem:[%s4435_s4 + $0x558] sm:$0xff]  }
  0x47   : > { %497 = vst [vmem:[%s4440_s5 + $0x2c0] sm:$0xff] %v496_v24   ;;  %501 = vst [vmem:[%s4440_s5 + $0x2c8] sm:$0xff] %v500_v25   ;;  %v508_v27 = vld [vmem:[%s4435_s4 + $0x560] sm:$0xff]   ;;  %v512_v28 = vld [vmem:[%s4435_s4 + $0x568] sm:$0xff]  }
  0x48   : > { %505 = vst [vmem:[%s4440_s5 + $0x2d0] sm:$0xff] %v504_v26   ;;  %509 = vst [vmem:[%s4440_s5 + $0x2d8] sm:$0xff] %v508_v27   ;;  %v516_v29 = vld [vmem:[%s4435_s4 + $0x570] sm:$0xff]   ;;  %v520_v30 = vld [vmem:[%s4435_s4 + $0x578] sm:$0xff]  }
  0x49   : > { %513 = vst [vmem:[%s4440_s5 + $0x2e0] sm:$0xff] %v512_v28   ;;  %v524_v31 = vld [vmem:[%s4435_s4 + $0x580] sm:$0xff]   ;;  %517 = vst [vmem:[%s4440_s5 + $0x2e8] sm:$0xff] %v516_v29   ;;  %v528_v32 = vld [vmem:[%s4435_s4 + $0x588] sm:$0xff]  }
  0x4a   : > { %521 = vst [vmem:[%s4440_s5 + $0x2f0] sm:$0xff] %v520_v30   ;;  %525 = vst [vmem:[%s4440_s5 + $0x2f8] sm:$0xff] %v524_v31   ;;  %v532_v33 = vld [vmem:[%s4435_s4 + $0x590] sm:$0xff]   ;;  %v536_v34 = vld [vmem:[%s4435_s4 + $0x598] sm:$0xff]  }
  0x4b   : > { %529 = vst [vmem:[%s4440_s5 + $0x300] sm:$0xff] %v528_v32   ;;  %533 = vst [vmem:[%s4440_s5 + $0x308] sm:$0xff] %v532_v33   ;;  %v540_v35 = vld [vmem:[%s4435_s4 + $0x5a0] sm:$0xff]   ;;  %v544_v36 = vld [vmem:[%s4435_s4 + $0x5a8] sm:$0xff]  }
  0x4c   : > { %537 = vst [vmem:[%s4440_s5 + $0x310] sm:$0xff] %v536_v34   ;;  %v548_v37 = vld [vmem:[%s4435_s4 + $0x5b0] sm:$0xff]   ;;  %541 = vst [vmem:[%s4440_s5 + $0x318] sm:$0xff] %v540_v35   ;;  %v552_v38 = vld [vmem:[%s4435_s4 + $0x5b8] sm:$0xff]  }
  0x4d   : > { %545 = vst [vmem:[%s4440_s5 + $0x320] sm:$0xff] %v544_v36   ;;  %549 = vst [vmem:[%s4440_s5 + $0x328] sm:$0xff] %v548_v37   ;;  %v556_v39 = vld [vmem:[%s4435_s4 + $0x5c0] sm:$0xff]   ;;  %v560_v40 = vld [vmem:[%s4435_s4 + $0x5c8] sm:$0xff]  }
  0x4e   : > { %553 = vst [vmem:[%s4440_s5 + $0x330] sm:$0xff] %v552_v38   ;;  %557 = vst [vmem:[%s4440_s5 + $0x338] sm:$0xff] %v556_v39   ;;  %v564_v41 = vld [vmem:[%s4435_s4 + $0x5d0] sm:$0xff]   ;;  %v568_v42 = vld [vmem:[%s4435_s4 + $0x5d8] sm:$0xff]  }
  0x4f   : > { %561 = vst [vmem:[%s4440_s5 + $0x340] sm:$0xff] %v560_v40   ;;  %v572_v43 = vld [vmem:[%s4435_s4 + $0x5e0] sm:$0xff]   ;;  %565 = vst [vmem:[%s4440_s5 + $0x348] sm:$0xff] %v564_v41  }
  0x50   : > { %569 = vst [vmem:[%s4440_s5 + $0x350] sm:$0xff] %v568_v42   ;;  %573 = vst [vmem:[%s4440_s5 + $0x358] sm:$0xff] %v572_v43  }
  0x51 PF: > { %p3575_p12 = scmp.ge.s32.totalorder %s4335_s16, 1  ;;  %p1030_p13 = scmp.lt.s32.totalorder %s4335_s16, 5 }
  0x53   : > { %p1031_p0 = pnand %p3575_p12, %p1030_p13 }
  0x55   : > { %1034 = sbr.rel (%p1031_p0) target bundleno = 500 (0x1f4), region = 65 }
  0x5a   : > { %v3597_v44 = vld [vmem:[%s5289_s1 + $0x2] sm:$0x3]  ;;  %vm1166_vm0 = vcmask 1040384   ;;  %vm1167_vm1 = vcmask 1041408   ;;  %s4661_s8 = sand.u32 1, %s4311_s10   ;;  %v4337_v45 = vmov 65535  }
  0x5b   : > { %v1168_v46 = vsel %vm1166_vm0, 4294967295, %v4337_v45  ;;  %s4121_s17 = smul.u32 864, %s4661_s8  ;;  %s3576_s18 = sshll.u32 %s4661_s8, 1  ;;  %v1079_v47 = vld [vmem:[%s5289_s1] sm:$0x3]  ;;  %vm1141_vm2 = vcmask 23552  }
  0x5c   : > { %v4668_v48 = vsel %vm1167_vm1, %v1168_v46, 0  ;;  %s3873_s25 = smul.u32 96, %s4319_s12  ;;  %v3630_v49 = vld [vmem:[%s5289_s1 + $0x4] sm:$0x3]  ;;  %v3664_v53 = vld [vmem:[%s5289_s1 + $0x6] sm:$0x3] }
  0x5d   : > { %v1171_v50 = vand.u32 %v3597_v44, %v4668_v48  ;;  %v1335_v51 = vand.u32 %v4668_v48, %v1079_v47  ;;  %s1039_s29 = scalar_lea.vmem [#allocation2], %s4121_s17  ;;  %v1704_v52 = vand.u32 %v3630_v49, %v4668_v48  ;;  %v3698_v54 = vld [vmem:[%s5289_s1 + $0x8] sm:$0x3]  ;;  %v4692_v59 = vand.u32 %v3664_v53, %v4668_v48  ;;  %v3739_v9 = vld [vmem:[%s5289_s1 + $0xa] sm:$0x3]  ;;  %p3868_p1 = scmp.ne.s32.totalorder %s4319_s12, 0 }
  0x5e   : > { %s4676_s30 = scalar_lea.vmem %s1039_s29, %s3873_s25 [#allocation2]  ;;  %vm1458_vm3 = vsmask.f32 3328  ;;  %vm1459_vm4 = vsmask.f32 7440  ;;  %v4697_v61 = vand.u32 %v3698_v54, %v4668_v48  ;;  %v4728_v31 = vand.u32 %v3739_v9, %v4668_v48 }
  0x5f   : > { %3955 = vmatprep.subr.bf16.mxu0 %v1171_v50  ;;  %4117 = vmatprep.subr.bf16.mxu1 %v1171_v50  ;;  %v4195_v55 = vld [vmem:[%s4676_s30 + $0xd8] sm:$0xff]   ;;  %v4196_v56 = vld [vmem:[%s4676_s30 + $0x108] sm:$0xff]   ;;  %v4199_v60 = vld [vmem:[%s4676_s30 + $0xf0] sm:$0xff]  }
  0x60   : > { %3956 = vmatpush3.bf16.msra.mxu0 %v1171_v50  ;;  %4118 = vmatpush3.bf16.msra.mxu1 %v1171_v50  ;;  %v4197_v57 = vld [vmem:[%s4676_s30 + $0xe4] sm:$0xff]   ;;  %v4198_v58 = vld [vmem:[%s4676_s30 + $0x114] sm:$0xff]   ;;  %v4201_v63 = vld [vmem:[%s4676_s30 + $0xfc] sm:$0xff]  }
  0x61   : > { %3957 = vmatprep.mubr.msk.bf16.mxu0 %vm1141_vm2, %v4195_v55  ;;  %3973 = vmatprep.subr.bf16.mxu1 %v1335_v51  ;;  %v4200_v62 = vld [vmem:[%s4676_s30 + $0x120] sm:$0xff]   ;;  %v4202_v0 = vld [vmem:[%s4676_s30 + $0x12c] sm:$0xff]   ;;  %v1436_v4 = vld [vmem:[%s4676_s30 + $0x8] sm:$0x1] }
  0x62   : > { %3965 = vmatprep.mubr.msk.bf16.mxu1 %vm1141_vm2, %v4196_v56  ;;  %3991 = vmatprep.subr.bf16.mxu0 %v1704_v52  ;;  %v4203_v1 = vld [vmem:[%s4676_s30] sm:$0xff]   ;;  %v1481_v10 = vshll.u32 %v1436_v4, 16  ;;  %v1437_v11 = vld [vmem:[%s4676_s30 + $0xc] sm:$0xf]  ;;  %v1438_v16 = vld [vmem:[%s4676_s30 + $0x10] sm:$0xf] }
  0x63   : > { %3958 = vmatmul.mubr.msk.bf16.vlgmr.msra.gmra.mxu0 %vm1141_vm2, %v4197_v57  ;;  %3966 = vmatmul.mubr.msk.bf16.vlgmr.msra.gmra.mxu1 %vm1141_vm2, %v4198_v58  ;;  %v1434_v2 = vld [vmem:[%s4676_s30] sm:$0xf]  ;;  %v1435_v3 = vld [vmem:[%s4676_s30 + $0x4] sm:$0xf]  ;;  %v1439_v18 = vld [vmem:[%s4676_s30 + $0x14] sm:$0x1] }
  0x64   : > { %3992 = vmatpush3.bf16.msra.mxu0 %v1704_v52  ;;  %3974 = vmatpush3.bf16.msra.mxu1 %v1335_v51  ;;  %v1462_v5 = vshrl.u32 %v1434_v2, 16  ;;  %v1465_v6 = vshll.u32 %v1434_v2, 16  ;;  %v1471_v7 = vshll.u32 %v1435_v3, 16  ;;  %v1475_v8 = vshrl.u32 %v1435_v3, 16  ;;  %vm4722_vm5 = vmor %vm1458_vm3, %vm1459_vm4  ;;  %v1440_v30 = vld [vmem:[%s4676_s30 + $0x18] sm:$0xf] }
  0x65   : > { %3961 = vmatprep.mubr.msk.bf16.mxu0 %vm1141_vm2, %v4199_v60  ;;  %3969 = vmatprep.mubr.msk.bf16.mxu1 %vm1141_vm2, %v4200_v62  ;;  %v1483_v17 = vrot.slane %v1481_v10, 5  ;;  %v1486_v19 = vshrl.u32 %v1437_v11, 16  ;;  %v1489_v20 = vshll.u32 %v1437_v11, 16  ;;  %v1495_v21 = vshll.u32 %v1438_v16, 16  ;;  %v1441_v36 = vld [vmem:[%s4676_s30 + $0x1c] sm:$0xf] }
  0x66   : > { %4009 = vmatprep.subr.bf16.mxu1 %v4692_v59  ;;  %4027 = vmatprep.subr.bf16.mxu0 %v4697_v61  ;;  %v1464_v12 = vrot.slane %v1462_v5, 4  ;;  %v1467_v13 = vrot.slane %v1465_v6, 5  ;;  %v1473_v14 = vrot.slane %v1471_v7, 5  ;;  %v1477_v15 = vrot.slane %v1475_v8, 4  ;;  %v4204_v37 = vld [vmem:[%s4676_s30 + $0xc] sm:$0xff]   ;;  %v4205_v46 = vld [vmem:[%s4676_s30 + $0x18] sm:$0xff]  }
  0x67   : > { %v1499_v24 = vshrl.u32 %v1438_v16, 16  ;;  %v1505_v25 = vshll.u32 %v1439_v18, 16  ;;  %v1488_v27 = vrot.slane %v1486_v19, 4  ;;  %v1491_v28 = vrot.slane %v1489_v20, 5  ;;  %v1442_v39 = vld [vmem:[%s4676_s30 + $0x20] sm:$0x1] }
  0x68   : > { %v1468_v22 = vor.u32 %v1467_v13, %v1464_v12  ;;  %v1478_v23 = vor.u32 %v1477_v15, %v1473_v14  ;;  %v1497_v29 = vrot.slane %v1495_v21, 5  ;;  %v1510_v40 = vshrl.u32 %v1440_v30, 16  ;;  %v1443_v53 = vld [vmem:[%s4676_s30 + $0x24] sm:$0xf]  ;;  %v1444_v58 = vld [vmem:[%s4676_s30 + $0x28] sm:$0xf] }
  0x69   : > { %v1501_v34 = vrot.slane %v1499_v24, 4  ;;  %v1507_v35 = vrot.slane %v1505_v25, 5  ;;  %v1492_v38 = vor.u32 %v1491_v28, %v1488_v27  ;;  %v1513_v41 = vshll.u32 %v1440_v30, 16  ;;  %v1446_v6 = vld [vmem:[%s4676_s30 + $0x30] sm:$0xf]  ;;  %v4206_v9 = vld [vmem:[%s4676_s30 + $0x24] sm:$0xff]  }
  0x6a   : > { %v1469_v32 = vrot.slane %v1468_v22, 4  ;;  %v1479_v33 = vrot.slane %v1478_v23, 4  ;;  %v1519_v42 = vshll.u32 %v1441_v36, 16  ;;  %v1523_v47 = vshrl.u32 %v1441_v36, 16  ;;  %v1447_v12 = vld [vmem:[%s4676_s30 + $0x34] sm:$0xf] }
  0x6b   : > { %3962 = vmatmul.mubr.msk.bf16.gmra.mxu0 %vm1141_vm2, %v4201_v63  ;;  %3970 = vmatmul.mubr.msk.bf16.gmra.mxu1 %vm1141_vm2, %v4202_v0  ;;  %v1502_v45 = vor.u32 %v1501_v34, %v1497_v29  ;;  %v1493_v50 = vrot.slane %v1492_v38, 4  ;;  %v1512_v51 = vrot.slane %v1510_v40, 4  ;;  %v1515_v52 = vrot.slane %v1513_v41, 5  ;;  %v1445_v63 = vld [vmem:[%s4676_s30 + $0x2c] sm:$0x1]  ;;  %v4207_v24 = vld [vmem:[%s4676_s30 + $0x30] sm:$0xff]  }
  0x6c   : > { %3975 = vmatprep.mubr.msk.bf16.mxu1 %vm1141_vm2, %v4203_v1  ;;  %v1474_v43 = vsel %vm4722_vm5, %v1469_v32, %v1473_v14  ;;  %v1484_v44 = vsel %vm4722_vm5, %v1479_v33, %v1483_v17  ;;  %v1521_v55 = vrot.slane %v1519_v42, 5  ;;  %v1525_v56 = vrot.slane %v1523_v47, 4  ;;  %v1448_v16 = vld [vmem:[%s4676_s30 + $0x38] sm:$0x1]  ;;  %v1449_v27 = vld [vmem:[%s4676_s30 + $0x3c] sm:$0xf] }
  0x6d   : > { %v3631_v49 = vcombine.low %v1474_v43, %v1484_v44  ;;  %v1503_v54 = vrot.slane %v1502_v45, 4  ;;  %v1529_v57 = vshll.u32 %v1442_v39, 16  ;;  %v1498_v60 = vsel %vm4722_vm5, %v1493_v50, %v1497_v29  ;;  %v1450_v33 = vld [vmem:[%s4676_s30 + $0x40] sm:$0xf] }
  0x6e   : > { %v1516_v62 = vor.u32 %v1515_v52, %v1512_v51  ;;  %v1534_v0 = vshrl.u32 %v1443_v53, 16  ;;  %v1537_v1 = vshll.u32 %v1443_v53, 16  ;;  %v1526_v3 = vor.u32 %v1525_v56, %v1521_v55  ;;  %v4208_v47 = vld [vmem:[%s4676_s30 + $0x3c] sm:$0xff]   ;;  %v1452_v52 = vld [vmem:[%s4676_s30 + $0x48] sm:$0xf] }
  0x6f   : > { %3993 = vmatprep.mubr.msk.bf16.mxu0 %vm1141_vm2, %v3631_v49  ;;  %v1508_v2 = vsel %vm4722_vm5, %v1503_v54, %v1507_v35  ;;  %v1531_v4 = vrot.slane %v1529_v57, 5  ;;  %v1543_v5 = vshll.u32 %v1444_v58, 16  ;;  %v1553_v15 = vshll.u32 %v1445_v63, 16  ;;  %v1453_v57 = vld [vmem:[%s4676_s30 + $0x4c] sm:$0xf] }
  0x70   : > { %v3632_v7 = vcombine.low %v1498_v60, %v1508_v2  ;;  %v1517_v8 = vrot.slane %v1516_v62, 4  ;;  %v1536_v10 = vrot.slane %v1534_v0, 4  ;;  %v1539_v11 = vrot.slane %v1537_v1, 5  ;;  %v4209_v0 = vld [vmem:[%s4676_s30 + $0x48] sm:$0xff]   ;;  %v1454_v1 = vld [vmem:[%s4676_s30 + $0x50] sm:$0x1] }
  0x71   : > { %v1527_v13 = vrot.slane %v1526_v3, 4  ;;  %v1545_v14 = vrot.slane %v1543_v5, 5  ;;  %v1558_v19 = vshrl.u32 %v1446_v6, 16  ;;  %v1561_v20 = vshll.u32 %v1446_v6, 16  ;;  %v1455_v6 = vld [vmem:[%s4676_s30 + $0x54] sm:$0xf] }
  0x72   : > { %v1522_v17 = vsel %vm4722_vm5, %v1517_v8, %v1521_v55  ;;  %v1540_v18 = vor.u32 %v1539_v11, %v1536_v10  ;;  %v1555_v23 = vrot.slane %v1553_v15, 5  ;;  %v1567_v25 = vshll.u32 %v1447_v12, 16  ;;  %v1456_v11 = vld [vmem:[%s4676_s30 + $0x58] sm:$0xf]  ;;  %v1457_v15 = vld [vmem:[%s4676_s30 + $0x5c] sm:$0x1] }
  0x73   : > { %3976 = vmatmul.mubr.msk.bf16.vlgmr.msra.gmra.mxu1 %vm1141_vm2, %v4204_v37  ;;  %3994 = vmatmul.mubr.msk.bf16.vlgmr.msra.gmra.mxu0 %vm1141_vm2, %v3632_v7  ;;  %v1532_v21 = vsel %vm4722_vm5, %v1527_v13, %v1531_v4  ;;  %v1560_v30 = vrot.slane %v1558_v19, 4  ;;  %v1563_v32 = vrot.slane %v1561_v20, 5  ;;  %v1571_v36 = vshrl.u32 %v1447_v12, 16 }
  0x74   : > { %4010 = vmatpush3.bf16.msra.mxu1 %v4692_v59  ;;  %3979 = vmatprep.mubr.msk.bf16.mxu1 %vm1141_vm2, %v4205_v46  ;;  %v1547_v59 = vshrl.u32 %v1444_v58, 16  ;;  %v3633_v28 = vcombine.low %v1522_v17, %v1532_v21  ;;  %v1541_v29 = vrot.slane %v1540_v18, 4  ;;  %v1569_v35 = vrot.slane %v1567_v25, 5  ;;  %v4210_v25 = vld [vmem:[%s4676_s30 + $0x54] sm:$0xff]  }
  0x75   : > { %4045 = vmatprep.subr.bf16.mxu1 %v4728_v31  ;;  %4028 = vmatpush3.bf16.msra.mxu0 %v4697_v61  ;;  %v1577_v37 = vshll.u32 %v1448_v16, 16  ;;  %v1451_v61 = vld [vmem:[%s4676_s30 + $0x44] sm:$0x1]  ;;  %v1564_v39 = vor.u32 %v1563_v32, %v1560_v30  ;;  %v1582_v40 = vshrl.u32 %v1449_v27, 16  ;;  %v1585_v41 = vshll.u32 %v1449_v27, 16 }
  0x76   : > { %v1549_v22 = vrot.slane %v1547_v59, 4  ;;  %3997 = vmatprep.mubr.msk.bf16.mxu0 %vm1141_vm2, %v3633_v28  ;;  %v1546_v38 = vsel %vm4722_vm5, %v1541_v29, %v1545_v14  ;;  %v1573_v43 = vrot.slane %v1571_v36, 4  ;;  %v1591_v45 = vshll.u32 %v1450_v33, 16 }
  0x77   : > { %v1579_v44 = vrot.slane %v1577_v37, 5  ;;  %v1565_v46 = vrot.slane %v1564_v39, 4  ;;  %v1584_v49 = vrot.slane %v1582_v40, 4  ;;  %v1587_v50 = vrot.slane %v1585_v41, 5  ;;  %v4211_v40 = vld [vmem:[%s4676_s30 + $0x1b0] sm:$0xff]  }
  0x78   : > { %v1550_v34 = vor.u32 %v1549_v22, %v1545_v14  ;;  %v1595_v51 = vshrl.u32 %v1450_v33, 16  ;;  %v1574_v54 = vor.u32 %v1573_v43, %v1569_v35  ;;  %v1593_v55 = vrot.slane %v1591_v45, 5  ;;  %v3774_v41 = vld [vmem:[%s5289_s1 + $0xc] sm:$0x3] }
  0x79   : > { %v1601_v56 = vshll.u32 %v1451_v61, 16  ;;  %v1570_v60 = vsel %vm4722_vm5, %v1565_v46, %v1569_v35  ;;  %v1588_v62 = vor.u32 %v1587_v50, %v1584_v49  ;;  %v1606_v4 = vshrl.u32 %v1452_v52, 16 }
  0x7a   : > { %v1551_v42 = vrot.slane %v1550_v34, 4  ;;  %v1597_v63 = vrot.slane %v1595_v51, 4  ;;  %v1575_v2 = vrot.slane %v1574_v54, 4  ;;  %v1609_v5 = vshll.u32 %v1452_v52, 16  ;;  %v4212_v54 = vld [vmem:[%s4676_s30 + $0x288] sm:$0xff]  }
  0x7b   : > { %3980 = vmatmul.mubr.msk.bf16.gmra.mxu1 %vm1141_vm2, %v4206_v9  ;;  %v1603_v3 = vrot.slane %v1601_v56, 5  ;;  %v1589_v7 = vrot.slane %v1588_v62, 4  ;;  %v1615_v9 = vshll.u32 %v1453_v57, 16  ;;  %v1619_v10 = vshrl.u32 %v1453_v57, 16  ;;  %v4215_v56 = vld [vmem:[%s4676_s30 + $0x1c8] sm:$0xff]   ;;  %v4214_v57 = vld [vmem:[%s4676_s30 + $0x294] sm:$0xff]  }
  0x7c   : > { %3983 = vmatprep.mubr.msk.bf16.mxu1 %vm1141_vm2, %v4207_v24  ;;  %v1556_v53 = vsel %vm4722_vm5, %v1551_v42, %v1555_v23  ;;  %v1598_v8 = vor.u32 %v1597_v63, %v1593_v55  ;;  %v1580_v12 = vsel %vm4722_vm5, %v1575_v2, %v1579_v44  ;;  %v1608_v13 = vrot.slane %v1606_v4, 4  ;;  %v3717_v62 = vld [vmem:[%s4676_s30 + $0x1b8] sm:$0x1] }
  0x7d   : > { %v3634_v58 = vcombine.low %v1546_v38, %v1556_v53  ;;  %v1611_v14 = vrot.slane %v1609_v5, 5  ;;  %v1625_v59 = vshll.u32 %v1454_v1, 16  ;;  %v3635_v16 = vcombine.low %v1570_v60, %v1580_v12  ;;  %v3716_v60 = vld [vmem:[%s4676_s30 + $0x1b4] sm:$0xf]  ;;  %v4216_v1 = vld [vmem:[%s4676_s30 + $0x2a0] sm:$0xff]  }
  0x7e   : > { %v1594_v17 = vsel %vm4722_vm5, %v1589_v7, %v1593_v55  ;;  %v1599_v18 = vrot.slane %v1598_v8, 4  ;;  %v1617_v19 = vrot.slane %v1615_v9, 5  ;;  %v1621_v21 = vrot.slane %v1619_v10, 4  ;;  %v4213_v55 = vld [vmem:[%s4676_s30 + $0x1bc] sm:$0xff]   ;;  %v4217_v2 = vld [vmem:[%s4676_s30 + $0x1d4] sm:$0xff]  }
  0x7f   : > { %3998 = vmatmul.mubr.msk.bf16.gmra.mxu0 %vm1141_vm2, %v3634_v58  ;;  %v1612_v20 = vor.u32 %v1611_v14, %v1608_v13  ;;  %v1627_v22 = vrot.slane %v1625_v59, 5  ;;  %v1630_v23 = vshrl.u32 %v1455_v6, 16  ;;  %v1633_v27 = vshll.u32 %v1455_v6, 16  ;;  %v3715_v58 = vld [vmem:[%s4676_s30 + $0x1b0] sm:$0xf]  ;;  %v4219_v12 = vld [vmem:[%s4676_s30 + $0x1e0] sm:$0xff]  }
  0x80   : > { %4001 = vmatprep.mubr.msk.bf16.mxu0 %vm1141_vm2, %v3635_v16  ;;  %v1604_v24 = vsel %vm4722_vm5, %v1599_v18, %v1603_v3  ;;  %v1639_v28 = vshll.u32 %v1456_v11, 16  ;;  %v1643_v29 = vshrl.u32 %v1456_v11, 16  ;;  %v1622_v33 = vor.u32 %v1621_v21, %v1617_v19  ;;  %v3718_v7 = vld [vmem:[%s4676_s30 + $0x1bc] sm:$0xf]  ;;  %v3719_v10 = vld [vmem:[%s4676_s30 + $0x1c0] sm:$0xf] }
  0x81   : > { %v3636_v30 = vcombine.low %v1594_v17, %v1604_v24  ;;  %v1613_v32 = vrot.slane %v1612_v20, 4  ;;  %v1632_v34 = vrot.slane %v1630_v23, 4  ;;  %v1635_v35 = vrot.slane %v1633_v27, 5  ;;  %v3720_v13 = vld [vmem:[%s4676_s30 + $0x1c4] sm:$0x1]  ;;  %v4218_v23 = vld [vmem:[%s4676_s30 + $0x2ac] sm:$0xff]  }
  0x82   : > { %v1641_v36 = vrot.slane %v1639_v28, 5  ;;  %v1645_v37 = vrot.slane %v1643_v29, 4  ;;  %v1649_v61 = vshll.u32 %v1457_v15, 16  ;;  %v1623_v39 = vrot.slane %v1622_v33, 4  ;;  %v3851_v28 = vld [vmem:[%s5289_s1 + $0x10] sm:$0x3] }
  0x83   : > { %3984 = vmatmul.mubr.msk.bf16.gmra.mxu1 %vm1141_vm2, %v4208_v47  ;;  %v1618_v38 = vsel %vm4722_vm5, %v1613_v32, %v1617_v19  ;;  %v1636_v42 = vor.u32 %v1635_v35, %v1632_v34  ;;  %v2690_v45 = vand.u32 %v3774_v41, %v4668_v48  ;;  %v2246_v63 = vshrl.u32 %v3715_v58, 16  ;;  %v3721_v29 = vld [vmem:[%s4676_s30 + $0x1c8] sm:$0xf]  ;;  %v3722_v32 = vld [vmem:[%s4676_s30 + $0x1cc] sm:$0xf] }
  0x84   : > { %3987 = vmatprep.mubr.msk.bf16.mxu1 %vm1141_vm2, %v4209_v0  ;;  %v1646_v43 = vor.u32 %v1645_v37, %v1641_v36  ;;  %v1651_v44 = vrot.slane %v1649_v61, 5  ;;  %v1628_v46 = vsel %vm4722_vm5, %v1623_v39, %v1627_v22  ;;  %v2249_v0 = vshll.u32 %v3715_v58, 16  ;;  %v3810_v22 = vld [vmem:[%s5289_s1 + $0xe] sm:$0x3]  ;;  %v3723_v33 = vld [vmem:[%s4676_s30 + $0x1d0] sm:$0x1] }
  0x85   : > { %v3637_v47 = vcombine.low %v1618_v38, %v1628_v46  ;;  %v1637_v49 = vrot.slane %v1636_v42, 4  ;;  %4063 = vmatprep.subr.bf16.mxu0 %v2690_v45  ;;  %v2255_v3 = vshll.u32 %v3716_v60, 16  ;;  %v2259_v4 = vshrl.u32 %v3716_v60, 16  ;;  %v4220_v61 = vld [vmem:[%s4676_s30 + $0x2b8] sm:$0xff]   ;;  %v4221_v38 = vld [vmem:[%s4676_s30 + $0x1ec] sm:$0xff]  }
  0x86   : > { %v1647_v50 = vrot.slane %v1646_v43, 4  ;;  %v2248_v5 = vrot.slane %v2246_v63, 4  ;;  %v2251_v6 = vrot.slane %v2249_v0, 5  ;;  %v2270_v11 = vshrl.u32 %v3718_v7, 16  ;;  %v3724_v42 = vld [vmem:[%s4676_s30 + $0x1d4] sm:$0xf] }
  0x87   : > { %4002 = vmatmul.mubr.msk.bf16.gmra.mxu0 %vm1141_vm2, %v3636_v30  ;;  %v1642_v51 = vsel %vm4722_vm5, %v1637_v49, %v1641_v36  ;;  %v4824_v8 = vrot.slane %v2255_v3, 5  ;;  %v2261_v9 = vrot.slane %v2259_v4, 4  ;;  %v2273_v14 = vshll.u32 %v3718_v7, 16  ;;  %v4223_v49 = vld [vmem:[%s4676_s30 + $0x1f8] sm:$0xff]   ;;  %v4222_v63 = vld [vmem:[%s4676_s30 + $0x2c4] sm:$0xff]  }
  0x88   : > { %4005 = vmatprep.mubr.msk.bf16.mxu0 %vm1141_vm2, %v3637_v47  ;;  %v1652_v52 = vsel %vm4722_vm5, %v1647_v50, %v1651_v44  ;;  %v2279_v59 = vshll.u32 %v3719_v10, 16  ;;  %v2283_v15 = vshrl.u32 %v3719_v10, 16  ;;  %v2252_v16 = vor.u32 %v2251_v6, %v2248_v5  ;;  %v3725_v47 = vld [vmem:[%s4676_s30 + $0x1d8] sm:$0xf]  ;;  %v3726_v3 = vld [vmem:[%s4676_s30 + $0x1dc] sm:$0x1] }
  0x89   : > { %v3638_v53 = vcombine.low %v1642_v51, %v1652_v52  ;;  %v2262_v17 = vor.u32 %v2261_v9, %v4824_v8  ;;  %v2272_v18 = vrot.slane %v2270_v11, 4  ;;  %v2275_v19 = vrot.slane %v2273_v14, 5  ;;  %v3728_v4 = vld [vmem:[%s4676_s30 + $0x1e4] sm:$0xf]  ;;  %v4224_v6 = vld [vmem:[%s4676_s30 + $0x2d0] sm:$0xff]  }
  0x8a   : > { %v4832_v20 = vrot.slane %v2279_v59, 5  ;;  %v2285_v21 = vrot.slane %v2283_v15, 4  ;;  %v4842_v27 = vand.u32 %v3810_v22, %v4668_v48  ;;  %v4850_v30 = vand.u32 %v3851_v28, %v4668_v48  ;;  %v4225_v10 = vld [vmem:[%s4676_s30 + $0x204] sm:$0xff]   ;;  %v3731_v22 = vld [vmem:[%s4676_s30 + $0x1f0] sm:$0xf] }
  0x8b   : > { %3988 = vmatmul.mubr.msk.bf16.gmra.mxu1 %vm1141_vm2, %v4210_v25  ;;  %v2289_v25 = vshll.u32 %v3720_v13, 16  ;;  %v2253_v34 = vrot.slane %v2252_v16, 4  ;;  %v2294_v35 = vshrl.u32 %v3721_v29, 16  ;;  %v2297_v36 = vshll.u32 %v3721_v29, 16  ;;  %v3730_v13 = vld [vmem:[%s4676_s30 + $0x1ec] sm:$0xf] }
  0x8c   : > { %4011 = vmatprep.mubr.msk.bf16.mxu1 %vm1141_vm2, %v4211_v40  ;;  %v2303_v37 = vshll.u32 %v3722_v32, 16  ;;  %v2263_v39 = vrot.slane %v2262_v17, 4  ;;  %v2276_v40 = vor.u32 %v2275_v19, %v2272_v18  ;;  %v2286_v41 = vor.u32 %v2285_v21, %v4832_v20  ;;  %v3729_v59 = vld [vmem:[%s4676_s30 + $0x1e8] sm:$0x1] }
  0x8d   : > { %v2307_v48 = vshrl.u32 %v3722_v32, 16  ;;  %v2296_v43 = vrot.slane %v2294_v35, 4  ;;  %v2299_v44 = vrot.slane %v2297_v36, 5  ;;  %v2313_v46 = vshll.u32 %v3723_v33, 16  ;;  %v3733_v35 = vld [vmem:[%s4676_s30 + $0x1f8] sm:$0xf] }
  0x8e   : > { %v2318_v51 = vshrl.u32 %v3724_v42, 16  ;;  %v2258_v52 = vsel %vm4722_vm5, %v2253_v34, %v4824_v8  ;;  %v4874_v58 = vrot.slane %v2286_v41, 4  ;;  %v2327_v60 = vshll.u32 %v3725_v47, 16 }
  0x8f   : > { %4006 = vmatmul.mubr.msk.bf16.gmra.mxu0 %vm1141_vm2, %v3638_v53  ;;  %v2309_v50 = vrot.slane %v2307_v48, 4  ;;  %v4868_v53 = vrot.slane %v2289_v25, 5  ;;  %v2337_v14 = vshll.u32 %v3726_v3, 16  ;;  %v2351_v17 = vshll.u32 %v3728_v4, 16 }
  0x90   : > { %4029 = vmatprep.mubr.msk.bf16.mxu0 %vm1141_vm2, %v4212_v54  ;;  %v2300_v54 = vor.u32 %v2299_v44, %v2296_v43  ;;  %v2320_v8 = vrot.slane %v2318_v51, 4  ;;  %v4889_v11 = vrot.slane %v2327_v60, 5  ;;  %v2355_v21 = vshrl.u32 %v3728_v4, 16 }
  0x91   : > { %v4898_v25 = vrot.slane %v2351_v17, 5  ;;  %v2366_v28 = vshrl.u32 %v3730_v13, 16  ;;  %v2292_v29 = vsel %vm4722_vm5, %v4874_v58, %v4868_v53  ;;  %v2369_v34 = vshll.u32 %v3730_v13, 16  ;;  %v3736_v58 = vld [vmem:[%s4676_s30 + $0x204] sm:$0xf] }
  0x92   : > { %v2301_v7 = vrot.slane %v2300_v54, 4  ;;  %v2357_v33 = vrot.slane %v2355_v21, 4  ;;  %v2379_v48 = vshrl.u32 %v3731_v22, 16  ;;  %v2393_v53 = vshll.u32 %v3733_v35, 16  ;;  %v4228_v21 = vld [vmem:[%s4676_s30 + $0x18] sm:$0xff]  }
  0x93   : > { %4012 = vmatmul.mubr.msk.bf16.vlgmr.msra.gmra.mxu1 %vm1141_vm2, %v4213_v55  ;;  %v2321_v55 = vshll.u32 %v3724_v42, 16  ;;  %v3734_v42 = vld [vmem:[%s4676_s30 + $0x1fc] sm:$0xf]  ;;  %v2368_v44 = vrot.slane %v2366_v28, 4 }
  0x94   : > { %4046 = vmatpush3.bf16.msra.mxu1 %v4728_v31  ;;  %4015 = vmatprep.mubr.msk.bf16.mxu1 %vm1141_vm2, %v4215_v56  ;;  %v2265_v31 = vshll.u32 %v3717_v62, 16  ;;  %v3727_v56 = vld [vmem:[%s4676_s30 + $0x1e0] sm:$0xf]  ;;  %v2331_v62 = vshrl.u32 %v3725_v47, 16  ;;  %v2358_v41 = vor.u32 %v2357_v33, %v4898_v25 }
  0x95   : > { %4081 = vmatprep.subr.bf16.mxu1 %v4842_v27  ;;  %v2342_v5 = vshrl.u32 %v3727_v56, 16  ;;  %v2323_v9 = vrot.slane %v2321_v55, 5  ;;  %v4226_v47 = vld [vmem:[%s4676_s30 + $0x2dc] sm:$0xff]  }
  0x96   : > { %v4839_v24 = vrot.slane %v2265_v31, 5  ;;  %v2345_v31 = vshll.u32 %v3727_v56, 16  ;;  %v2399_v56 = vshll.u32 %v3734_v42, 16 }
  0x97   : > { %4030 = vmatmul.mubr.msk.bf16.vlgmr.msra.gmra.mxu0 %vm1141_vm2, %v4214_v57  ;;  %v4872_v57 = vrot.slane %v2276_v40, 4  ;;  %v2344_v15 = vrot.slane %v2342_v5, 4  ;;  %v2339_v40 = vrot.slane %v2337_v14, 5  ;;  %v2395_v5 = vrot.slane %v2393_v53, 5 }
  0x98   : > { %4064 = vmatpush3.bf16.msra.mxu0 %v2690_v45  ;;  %4033 = vmatprep.mubr.msk.bf16.mxu0 %vm1141_vm2, %v4216_v1  ;;  %v4860_v45 = vrot.slane %v2303_v37, 5  ;;  %v2268_v0 = vsel %vm4722_vm5, %v2263_v39, %v4839_v24  ;;  %v2347_v16 = vrot.slane %v2345_v31, 5  ;;  %v2324_v24 = vor.u32 %v2323_v9, %v2320_v8 }
  0x99   : > { %4099 = vmatprep.subr.bf16.mxu0 %v4850_v30  ;;  %v3740_v18 = vcombine.low %v2258_v52, %v2268_v0  ;;  %v2361_v37 = vshll.u32 %v3729_v59, 16  ;;  %v2381_v52 = vrot.slane %v2379_v48, 4  ;;  %v2414_v9 = vshrl.u32 %v3736_v58, 16 }
  0x9a   : > { %v2310_v1 = vor.u32 %v2309_v50, %v4860_v45  ;;  %v2348_v36 = vor.u32 %v2347_v16, %v2344_v15  ;;  %v2325_v43 = vrot.slane %v2324_v24, 4  ;;  %v2417_v31 = vshll.u32 %v3736_v58, 16  ;;  %v3827_v15 = vld [vmem:[%s4676_s30 + $0xc] sm:$0xf] }
  0x9b   : > { %4016 = vmatmul.mubr.msk.bf16.gmra.mxu1 %vm1141_vm2, %v4217_v2  ;;  %v4882_v2 = vrot.slane %v2313_v46, 5  ;;  %v2390_v46 = vshrl.u32 %v3733_v35, 16  ;;  %v2363_v55 = vrot.slane %v2361_v37, 5  ;;  %v2416_v28 = vrot.slane %v2414_v9, 4  ;;  %v3738_v35 = vld [vmem:[%s4676_s30 + $0x20c] sm:$0x1] }
  0x9c   : > { %4019 = vmatprep.mubr.msk.bf16.mxu1 %vm1141_vm2, %v4219_v12  ;;  %v2333_v12 = vrot.slane %v2331_v62, 4  ;;  %v2311_v19 = vrot.slane %v2310_v1, 4  ;;  %v2349_v54 = vrot.slane %v2348_v36, 4  ;;  %v3735_v1 = vld [vmem:[%s4676_s30 + $0x200] sm:$0x1]  ;;  %v3031_v33 = vshrl.u32 %v3827_v15, 16 }
  0x9d   : > { %v2392_v4 = vrot.slane %v2390_v46, 4  ;;  %v2433_v46 = vshll.u32 %v3738_v35, 16  ;;  %v3839_v35 = vld [vmem:[%s4676_s30 + $0x3c] sm:$0xf] }
  0x9e   : > { %v2334_v32 = vor.u32 %v2333_v12, %v4889_v11  ;;  %v2316_v39 = vsel %vm4722_vm5, %v2311_v19, %v4882_v2  ;;  %v3737_v2 = vld [vmem:[%s4676_s30 + $0x208] sm:$0xf]  ;;  %v2330_v12 = vsel %vm4722_vm5, %v2325_v43, %v4889_v11  ;;  %v2354_v14 = vsel %vm4722_vm5, %v2349_v54, %v4898_v25  ;;  %v3828_v19 = vld [vmem:[%s4676_s30 + $0x10] sm:$0xf]  ;;  %v3831_v43 = vld [vmem:[%s4676_s30 + $0x1c] sm:$0xf] }
  0x9f   : > { %4034 = vmatmul.mubr.msk.bf16.gmra.mxu0 %vm1141_vm2, %v4218_v23  ;;  %v2282_v23 = vsel %vm4722_vm5, %v4872_v57, %v4832_v20  ;;  %v2306_v20 = vsel %vm4722_vm5, %v2301_v7, %v4860_v45  ;;  %v2371_v45 = vrot.slane %v2369_v34, 5  ;;  %v2403_v57 = vshrl.u32 %v3734_v42, 16 }
  0xa0   : > { %4037 = vmatprep.mubr.msk.bf16.mxu0 %vm1141_vm2, %v4220_v61  ;;  %v3732_v61 = vld [vmem:[%s4676_s30 + $0x1f4] sm:$0x1]  ;;  %v2335_v50 = vrot.slane %v2334_v32, 4  ;;  %v3741_v60 = vcombine.low %v2282_v23, %v2292_v29  ;;  %v3742_v62 = vcombine.low %v2306_v20, %v2316_v39  ;;  %v2427_v59 = vshrl.u32 %v3737_v2, 16  ;;  %v3830_v39 = vld [vmem:[%s4676_s30 + $0x18] sm:$0xf] }
  0xa1   : > { %v2385_v0 = vshll.u32 %v3732_v61, 16  ;;  %v2372_v3 = vor.u32 %v2371_v45, %v2368_v44  ;;  %v2405_v8 = vrot.slane %v2403_v57, 4  ;;  %v2409_v11 = vshll.u32 %v3735_v1, 16 }
  0xa2   : > { %v2340_v13 = vsel %vm4722_vm5, %v2335_v50, %v2339_v40  ;;  %v2396_v24 = vor.u32 %v2395_v5, %v2392_v4  ;;  %v2419_v29 = vrot.slane %v2417_v31, 5  ;;  %v2429_v32 = vrot.slane %v2427_v59, 4 }
  0xa3   : > { %4020 = vmatmul.mubr.msk.bf16.gmra.mxu1 %vm1141_vm2, %v4221_v38  ;;  %v2375_v38 = vshll.u32 %v3731_v22, 16  ;;  %v2373_v17 = vrot.slane %v2372_v3, 4  ;;  %v4229_v22 = vld [vmem:[%s4676_s30 + $0x24] sm:$0xff]   ;;  %v3743_v34 = vcombine.low %v2330_v12, %v2340_v13  ;;  %v3034_v20 = vshll.u32 %v3827_v15, 16  ;;  %v3832_v12 = vld [vmem:[%s4676_s30 + $0x20] sm:$0x1] }
  0xa4   : > { %4023 = vmatprep.mubr.msk.bf16.mxu1 %vm1141_vm2, %v4223_v49  ;;  %v4227_v49 = vld [vmem:[%s4676_s30 + $0xc] sm:$0xff]   ;;  %v3040_v36 = vshll.u32 %v3828_v19, 16  ;;  %v2411_v61 = vrot.slane %v2409_v11, 5  ;;  %v2397_v48 = vrot.slane %v2396_v24, 4  ;;  %v2420_v44 = vor.u32 %v2419_v29, %v2416_v28  ;;  %v4233_v24 = vld [vmem:[%s4676_s30 + $0x54] sm:$0xff]  }
  0xa5   : > { %v4921_v51 = vrot.slane %v2375_v38, 5  ;;  %v3044_v38 = vshrl.u32 %v3828_v19, 16  ;;  %v3036_v50 = vrot.slane %v3034_v20, 5  ;;  %v3058_v53 = vshll.u32 %v3830_v39, 16 }
  0xa6   : > { %v3064_v54 = vshll.u32 %v3831_v43, 16  ;;  %v3068_v58 = vshrl.u32 %v3831_v43, 16  ;;  %v2435_v1 = vrot.slane %v2433_v46, 5  ;;  %v3074_v29 = vshll.u32 %v3832_v12, 16  ;;  %v3843_v12 = vld [vmem:[%s4676_s30 + $0x4c] sm:$0xf] }
  0xa7   : > { %4038 = vmatmul.mubr.msk.bf16.gmra.mxu0 %vm1141_vm2, %v4222_v63  ;;  %v2359_v63 = vrot.slane %v2358_v41, 4  ;;  %v2382_v7 = vor.u32 %v2381_v52, %v4921_v51  ;;  %v2378_v40 = vsel %vm4722_vm5, %v2373_v17, %v4921_v51  ;;  %v4965_v51 = vrot.slane %v3040_v36, 5 }
  0xa8   : > { %4041 = vmatprep.mubr.msk.bf16.mxu0 %vm1141_vm2, %v4224_v6  ;;  %v4926_v6 = vrot.slane %v2399_v56, 5  ;;  %v3055_v52 = vshrl.u32 %v3830_v39, 16  ;;  %v4978_v31 = vrot.slane %v3064_v54, 5  ;;  %v4235_v39 = vld [vmem:[%s4676_s30 + $0xe4] sm:$0xff]   ;;  %v3130_v46 = vshll.u32 %v3839_v35, 16 }
  0xa9   : > { %v2364_v16 = vsel %vm4722_vm5, %v2359_v63, %v2363_v55  ;;  %v2383_v23 = vrot.slane %v2382_v7, 4  ;;  %v4230_v55 = vld [vmem:[%s4676_s30 + $0x30] sm:$0xff]   ;;  %v2421_v63 = vrot.slane %v2420_v44, 4  ;;  %v3060_v7 = vrot.slane %v3058_v53, 5 }
  0xaa   : > { %v2406_v25 = vor.u32 %v2405_v8, %v4926_v6  ;;  %v3744_v37 = vcombine.low %v2354_v14, %v2364_v16  ;;  %v2402_v56 = vsel %vm4722_vm5, %v2397_v48, %v4926_v6  ;;  %v3057_v5 = vrot.slane %v3055_v52, 4  ;;  %v3834_v8 = vld [vmem:[%s4676_s30 + $0x28] sm:$0xf] }
  0xab   : > { %4024 = vmatmul.mubr.msk.bf16.gmra.mxu1 %vm1141_vm2, %v4225_v10  ;;  %v2423_v10 = vshll.u32 %v3737_v2, 16  ;;  %v3833_v2 = vld [vmem:[%s4676_s30 + $0x24] sm:$0xf]  ;;  %v3088_v16 = vshll.u32 %v3834_v8, 16  ;;  %v3092_v17 = vshrl.u32 %v3834_v8, 16  ;;  %v3076_v44 = vrot.slane %v3074_v29, 5 }
  0xac   : > { %4047 = vmatprep.mubr.msk.bf16.mxu1 %vm1141_vm2, %v3740_v18  ;;  %v2387_v18 = vrot.slane %v2385_v0, 5  ;;  %v2407_v42 = vrot.slane %v2406_v25, 4  ;;  %v3079_v13 = vshrl.u32 %v3833_v2, 16  ;;  %v3082_v14 = vshll.u32 %v3833_v2, 16 }
  0xad   : > { %v4997_v20 = vrot.slane %v3088_v16, 5  ;;  %v3094_v36 = vrot.slane %v3092_v17, 4 }
  0xae   : > { %v2388_v41 = vsel %vm4722_vm5, %v2383_v23, %v2387_v18  ;;  %v2412_v57 = vsel %vm4722_vm5, %v2407_v42, %v2411_v61  ;;  %v4232_v18 = vld [vmem:[%s4676_s30 + $0x48] sm:$0xff]   ;;  %v3836_v23 = vld [vmem:[%s4676_s30 + $0x30] sm:$0xf] }
  0xaf   : > { %4042 = vmatmul.mubr.msk.bf16.gmra.mxu0 %vm1141_vm2, %v4226_v47  ;;  %v3033_v47 = vrot.slane %v3031_v33, 4  ;;  %v3746_v9 = vcombine.low %v2402_v56, %v2412_v57  ;;  %v3081_v33 = vrot.slane %v3079_v13, 4  ;;  %v3106_v61 = vshll.u32 %v3836_v23, 16  ;;  %v4234_v56 = vld [vmem:[%s4676_s30 + $0x60] sm:$0xff]  }
  0xb0   : > { %4065 = vmatprep.mubr.msk.bf16.mxu0 %vm1141_vm2, %v4227_v49  ;;  %v3829_v49 = vld [vmem:[%s4676_s30 + $0x14] sm:$0x1] }
  0xb1   : > { %v3037_v3 = vor.u32 %v3036_v50, %v3033_v47  ;;  %v3050_v4 = vshll.u32 %v3829_v49, 16 }
  0xb3   : > { %4048 = vmatmul.mubr.msk.bf16.vlgmr.msra.gmra.mxu1 %vm1141_vm2, %v3741_v60  ;;  %v4231_v60 = vld [vmem:[%s4676_s30 + $0x3c] sm:$0xff]   ;;  %v3038_v11 = vrot.slane %v3037_v3, 4  ;;  %v3052_v19 = vrot.slane %v3050_v4, 5  ;;  %v3841_v3 = vld [vmem:[%s4676_s30 + $0x44] sm:$0x1] }
  0xb4   : > { %4082 = vmatpush3.bf16.msra.mxu1 %v4842_v27  ;;  %4051 = vmatprep.mubr.msk.bf16.mxu1 %vm1141_vm2, %v3742_v62  ;;  %v4949_v27 = vrot.slane %v2423_v10, 5  ;;  %v3745_v62 = vcombine.low %v2378_v40, %v2388_v41  ;;  %v3070_v10 = vrot.slane %v3068_v58, 4  ;;  %v3838_v58 = vld [vmem:[%s4676_s30 + $0x38] sm:$0x1]  ;;  %v3146_v16 = vshll.u32 %v3841_v3, 16 }
  0xb5   : > { %v3043_v47 = vsel %vm4722_vm5, %v3038_v11, %v4965_v51  ;;  %v3846_v11 = vld [vmem:[%s4676_s30 + $0x58] sm:$0xf] }
  0xb6   : > { %v2430_v45 = vor.u32 %v2429_v32, %v4949_v27  ;;  %v2426_v59 = vsel %vm4722_vm5, %v2421_v63, %v4949_v27  ;;  %v3071_v28 = vor.u32 %v3070_v10, %v4978_v31  ;;  %v3837_v27 = vld [vmem:[%s4676_s30 + $0x34] sm:$0xf]  ;;  %v3122_v10 = vshll.u32 %v3838_v58, 16 }
  0xb7   : > { %4066 = vmatmul.mubr.msk.bf16.vlgmr.msra.gmra.mxu0 %vm1141_vm2, %v4228_v21  ;;  %v3061_v21 = vor.u32 %v3060_v7, %v3057_v5  ;;  %v3112_v48 = vshll.u32 %v3837_v27, 16  ;;  %v3116_v42 = vshrl.u32 %v3837_v27, 16  ;;  %v3842_v7 = vld [vmem:[%s4676_s30 + $0x48] sm:$0xf] }
  0xb8   : > { %4100 = vmatpush3.bf16.msra.mxu0 %v4850_v30  ;;  %4069 = vmatprep.mubr.msk.bf16.mxu0 %vm1141_vm2, %v4229_v22  ;;  %v3046_v30 = vrot.slane %v3044_v38, 4  ;;  %v2431_v0 = vrot.slane %v2430_v45, 4  ;;  %v3835_v22 = vld [vmem:[%s4676_s30 + $0x2c] sm:$0x1]  ;;  %v3840_v38 = vld [vmem:[%s4676_s30 + $0x40] sm:$0xf] }
  0xb9   : > { %v3062_v40 = vrot.slane %v3061_v21, 4  ;;  %v3098_v41 = vshll.u32 %v3835_v22, 16  ;;  %v3072_v43 = vrot.slane %v3071_v28, 4  ;;  %v3127_v45 = vshrl.u32 %v3839_v35, 16 }
  0xba   : > { %v3047_v6 = vor.u32 %v3046_v30, %v4965_v51  ;;  %v2436_v15 = vsel %vm4722_vm5, %v2431_v0, %v2435_v1  ;;  %v3136_v50 = vshll.u32 %v3840_v38, 16  ;;  %v3140_v52 = vshrl.u32 %v3840_v38, 16  ;;  %v3844_v38 = vld [vmem:[%s4676_s30 + $0x50] sm:$0x1] }
  0xbb   : > { %4052 = vmatmul.mubr.msk.bf16.gmra.mxu1 %vm1141_vm2, %v3743_v34  ;;  %v3747_v32 = vcombine.low %v2426_v59, %v2436_v15  ;;  %v3084_v34 = vrot.slane %v3082_v14, 5  ;;  %v3095_v30 = vor.u32 %v3094_v36, %v4997_v20  ;;  %v3100_v57 = vrot.slane %v3098_v41, 5  ;;  %v4237_v14 = vld [vmem:[%s4676_s30 + $0xfc] sm:$0xff]  }
  0xbc   : > { %4055 = vmatprep.mubr.msk.bf16.mxu1 %vm1141_vm2, %v3744_v37  ;;  %v3048_v25 = vrot.slane %v3047_v6, 4  ;;  %v3103_v37 = vshrl.u32 %v3836_v23, 16  ;;  %v5012_v51 = vrot.slane %v3112_v48, 5  ;;  %v3077_v63 = vsel %vm4722_vm5, %v3072_v43, %v3076_v44  ;;  %v3848_v43 = vld [vmem:[%s4676_s30 + $0x60] sm:$0xf] }
  0xbd   : > { %v3085_v53 = vor.u32 %v3084_v34, %v3081_v33  ;;  %v3129_v0 = vrot.slane %v3127_v45, 4  ;;  %v3132_v1 = vrot.slane %v3130_v46, 5  ;;  %v5021_v4 = vrot.slane %v3136_v50, 5 }
  0xbe   : > { %v3053_v49 = vsel %vm4722_vm5, %v3048_v25, %v3052_v19  ;;  %v3105_v54 = vrot.slane %v3103_v37, 4  ;;  %v3142_v5 = vrot.slane %v3140_v52, 4  ;;  %v3151_v17 = vshrl.u32 %v3842_v7, 16 }
  0xbf   : > { %4070 = vmatmul.mubr.msk.bf16.gmra.mxu0 %vm1141_vm2, %v4230_v55  ;;  %v3108_v55 = vrot.slane %v3106_v61, 5  ;;  %v3852_v2 = vcombine.low %v3043_v47, %v3053_v49  ;;  %v3086_v8 = vrot.slane %v3085_v53, 4  ;;  %v3133_v15 = vor.u32 %v3132_v1, %v3129_v0  ;;  %v3849_v49 = vld [vmem:[%s4676_s30 + $0x64] sm:$0xf]  ;;  %v4239_v53 = vld [vmem:[%s4676_s30 + $0x114] sm:$0xff]  }
  0xc0   : > { %4073 = vmatprep.mubr.msk.bf16.mxu0 %vm1141_vm2, %v4231_v60  ;;  %v3118_v60 = vrot.slane %v3116_v42, 4  ;;  %v3143_v19 = vor.u32 %v3142_v5, %v5021_v4  ;;  %v3154_v21 = vshll.u32 %v3842_v7, 16  ;;  %v3160_v22 = vshll.u32 %v3843_v12, 16  ;;  %v4238_v42 = vld [vmem:[%s4676_s30 + $0x108] sm:$0xff]  }
  0xc1   : > { %v3109_v6 = vor.u32 %v3108_v55, %v3105_v54  ;;  %v3164_v23 = vshrl.u32 %v3843_v12, 16  ;;  %v3124_v29 = vrot.slane %v3122_v10, 5  ;;  %v3184_v33 = vshll.u32 %v3846_v11, 16  ;;  %v3847_v54 = vld [vmem:[%s4676_s30 + $0x5c] sm:$0x1] }
  0xc2   : > { %v3119_v59 = vor.u32 %v3118_v60, %v5012_v51  ;;  %v3188_v34 = vshrl.u32 %v3846_v11, 16  ;;  %v3134_v36 = vrot.slane %v3133_v15, 4  ;;  %v3148_v37 = vrot.slane %v3146_v16, 5  ;;  %v3850_v15 = vld [vmem:[%s4676_s30 + $0x68] sm:$0x1]  ;;  %v4241_v16 = vld [vmem:[%s4676_s30 + $0x12c] sm:$0xff]  }
  0xc3   : > { %4056 = vmatmul.mubr.msk.bf16.gmra.mxu1 %vm1141_vm2, %v3745_v62  ;;  %v3067_v62 = vsel %vm4722_vm5, %v3062_v40, %v4978_v31  ;;  %v4236_v31 = vld [vmem:[%s4676_s30 + $0xf0] sm:$0xff]   ;;  %v3110_v28 = vrot.slane %v3109_v6, 4  ;;  %v3144_v61 = vrot.slane %v3143_v19, 4  ;;  %v3162_v40 = vrot.slane %v3160_v22, 5 }
  0xc4   : > { %4059 = vmatprep.mubr.msk.bf16.mxu1 %vm1141_vm2, %v3746_v9  ;;  %v3096_v9 = vrot.slane %v3095_v30, 4  ;;  %v3853_v13 = vcombine.low %v3067_v62, %v3077_v63  ;;  %v3120_v35 = vrot.slane %v3119_v59, 4  ;;  %v3166_v41 = vrot.slane %v3164_v23, 4 }
  0xc5   : > { %v3186_v46 = vrot.slane %v3184_v33, 5  ;;  %v3190_v47 = vrot.slane %v3188_v34, 4  ;;  %v3115_v50 = vsel %vm4722_vm5, %v3110_v28, %v5012_v51  ;;  %v3170_v30 = vshll.u32 %v3844_v38, 16 }
  0xc6   : > { %v3101_v25 = vsel %vm4722_vm5, %v3096_v9, %v3100_v57  ;;  %v3125_v52 = vsel %vm4722_vm5, %v3120_v35, %v3124_v29  ;;  %v3139_v55 = vsel %vm4722_vm5, %v3134_v36, %v5021_v4  ;;  %v3167_v58 = vor.u32 %v3166_v41, %v3162_v40 }
  0xc7   : > { %4074 = vmatmul.mubr.msk.bf16.gmra.mxu0 %vm1141_vm2, %v4232_v18  ;;  %v3845_v18 = vld [vmem:[%s4676_s30 + $0x54] sm:$0xf]  ;;  %v3199_v51 = vshrl.u32 %v3848_v43, 16  ;;  %v3202_v60 = vshll.u32 %v3848_v43, 16  ;;  %v3208_v62 = vshll.u32 %v3849_v49, 16  ;;  %v3212_v63 = vshrl.u32 %v3849_v49, 16 }
  0xc8   : > { %4077 = vmatprep.mubr.msk.bf16.mxu0 %vm1141_vm2, %v4233_v24  ;;  %v3091_v24 = vsel %vm4722_vm5, %v3086_v8, %v4997_v20  ;;  %v3175_v27 = vshrl.u32 %v3845_v18, 16  ;;  %v3153_v20 = vrot.slane %v3151_v17, 4  ;;  %v3191_v1 = vor.u32 %v3190_v47, %v3186_v46 }
  0xc9   : > { %v3854_v48 = vcombine.low %v3091_v24, %v3101_v25  ;;  %v3855_v3 = vcombine.low %v3115_v50, %v3125_v52  ;;  %v3168_v7 = vrot.slane %v3167_v58, 4  ;;  %v3172_v8 = vrot.slane %v3170_v30, 5 }
  0xca   : > { %v3177_v44 = vrot.slane %v3175_v27, 4  ;;  %v3201_v9 = vrot.slane %v3199_v51, 4  ;;  %v3204_v6 = vrot.slane %v3202_v60, 5  ;;  %v3210_v10 = vrot.slane %v3208_v62, 5 }
  0xcb   : > { %4060 = vmatmul.mubr.msk.bf16.gmra.mxu1 %vm1141_vm2, %v3747_v32  ;;  %v3178_v32 = vshll.u32 %v3845_v18, 16  ;;  %v3214_v12 = vrot.slane %v3212_v63, 4  ;;  %v3173_v18 = vsel %vm4722_vm5, %v3168_v7, %v3172_v8 }
  0xcc   : > { %4083 = vmatprep.mubr.msk.bf16.mxu1 %vm1141_vm2, %v4235_v39  ;;  %v3156_v39 = vrot.slane %v3154_v21, 5  ;;  %v3205_v11 = vor.u32 %v3204_v6, %v3201_v9  ;;  %v3218_v21 = vshll.u32 %v3850_v15, 16 }
  0xcd   : > { %v3180_v45 = vrot.slane %v3178_v32, 5  ;;  %v3215_v19 = vor.u32 %v3214_v12, %v3210_v10  ;;  %v4242_v32 = vld [vmem:[%s4676_s30 + $0x138] sm:$0xff]  }
  0xce   : > { %v3157_v57 = vor.u32 %v3156_v39, %v3153_v20  ;;  %v3206_v28 = vrot.slane %v3205_v11, 4  ;;  %v3220_v27 = vrot.slane %v3218_v21, 5 }
  0xcf   : > { %4078 = vmatmul.mubr.msk.bf16.gmra.mxu0 %vm1141_vm2, %v4234_v56  ;;  %v3149_v56 = vsel %vm4722_vm5, %v3144_v61, %v3148_v37  ;;  %v3181_v0 = vor.u32 %v3180_v45, %v3177_v44  ;;  %v3216_v29 = vrot.slane %v3215_v19, 4 }
  0xd0   : > { %4101 = vmatprep.mubr.msk.bf16.mxu0 %vm1141_vm2, %v3852_v2  ;;  %v3194_v2 = vshll.u32 %v3847_v54, 16  ;;  %v3856_v4 = vcombine.low %v3139_v55, %v3149_v56  ;;  %v3158_v5 = vrot.slane %v3157_v57, 4  ;;  %v3211_v33 = vsel %vm4722_vm5, %v3206_v28, %v3210_v10 }
  0xd1   : > { %v3221_v34 = vsel %vm4722_vm5, %v3216_v29, %v3220_v27 }
  0xd2   : > { %v3196_v59 = vrot.slane %v3194_v2, 5  ;;  %v3163_v17 = vsel %vm4722_vm5, %v3158_v5, %v3162_v40  ;;  %v3859_v35 = vcombine.low %v3211_v33, %v3221_v34 }
  0xd3   : > { %4084 = vmatmul.mubr.msk.bf16.vlgmr.msra.gmra.mxu1 %vm1141_vm2, %v4236_v31  ;;  %v4240_v31 = vld [vmem:[%s4676_s30 + $0x120] sm:$0xff]   ;;  %v3857_v24 = vcombine.low %v3163_v17, %v3173_v18  ;;  %s5210_s30 = scalar_lea.vmem [#allocation3], %s3576_s18 }
  0xd4   : > { %4087 = vmatprep.mubr.msk.bf16.mxu1 %vm1141_vm2, %v4237_v14  ;;  %v3192_v14 = vrot.slane %v3191_v1, 4 }
  0xd6   : > { %v3197_v23 = vsel %vm4722_vm5, %v3192_v14, %v3196_v59 }
  0xd7   : > { %4102 = vmatmul.mubr.msk.bf16.vlgmr.msra.gmra.mxu0 %vm1141_vm2, %v3853_v13  ;;  %v3182_v13 = vrot.slane %v3181_v0, 4 }
  0xd8   : > { %4105 = vmatprep.mubr.msk.bf16.mxu0 %vm1141_vm2, %v3854_v48 }
  0xd9   : > { %v3187_v22 = vsel %vm4722_vm5, %v3182_v13, %v3186_v46 }
  0xda   : > { %v3858_v25 = vcombine.low %v3187_v22, %v3197_v23 }
  0xdb   : > { %4088 = vmatmul.mubr.msk.bf16.gmra.mxu1 %vm1141_vm2, %v4238_v42 }
  0xdc   : > { %4091 = vmatprep.mubr.msk.bf16.mxu1 %vm1141_vm2, %v4239_v53 }
  0xdf   : > { %4106 = vmatmul.mubr.msk.bf16.gmra.mxu0 %vm1141_vm2, %v3855_v3 }
  0xe0   : > { %4109 = vmatprep.mubr.msk.bf16.mxu0 %vm1141_vm2, %v3856_v4 }
  0xe3   : > { %4092 = vmatmul.mubr.msk.bf16.gmra.mxu1 %vm1141_vm2, %v4240_v31 }
  0xe4   : > { %4095 = vmatprep.mubr.msk.bf16.mxu1 %vm1141_vm2, %v4241_v16 }
  0xe7   : > { %4110 = vmatmul.mubr.msk.bf16.gmra.mxu0 %vm1141_vm2, %v3857_v24 }
  0xe8   : > { %4113 = vmatprep.mubr.msk.bf16.mxu0 %vm1141_vm2, %v3858_v25 }
  0xeb   : > { %4096 = vmatmul.mubr.msk.bf16.gmra.mxu1 %vm1141_vm2, %v4242_v32 }
  0xef   : > { %4114 = vmatmul.mubr.msk.bf16.gmra.mxu0 %vm1141_vm2, %v3859_v35 }
 0x123   : > { %v3959_v36 = vpop.f32.mrf.mxu0  ;;  %v3967_v37 = vpop.f32.mrf.mxu1 }
 0x125   : > { %v1207_v20 = vpop.f32.mrf.mxu0  ;;  %v1239_v61 = vpop.f32.mrf.mxu1 }
 0x127   : > { %v3960_v38 = vpop.f32.mrf.mxu0  ;;  %v3968_v39 = vpop.f32.mrf.mxu1 }
 0x129   : > { %v1210_v40 = vpop.f32.mrf.mxu0  ;;  %v1242_v41 = vpop.f32.mrf.mxu1 }
 0x12b   : > { %v3963_v48 = vpop.f32.mrf.mxu0  ;;  %v3971_v42 = vpop.f32.mrf.mxu1 }
 0x12d   : > { %v1223_v43 = vpop.f32.mrf.mxu0  ;;  %v1255_v44 = vpop.f32.mrf.mxu1 }
 0x12f   : > { %v3964_v45 = vpop.f32.mrf.mxu0  ;;  %v3972_v26 = vpop.f32.mrf.mxu1 }
 0x131   : > { %v1258_v46 = vpop.f32.mrf.mxu1  ;;  %v1226_v47 = vpop.f32.mrf.mxu0 }
 0x133   : > { %v3977_v49 = vpop.f32.mrf.mxu1  ;;  %v3995_v30 = vpop.f32.mrf.mxu0 }
 0x134   : > { %v1380_v50 = vadd.f32 %v3977_v49, %v3959_v36 }
 0x135   : > { %v1371_v52 = vpop.f32.mrf.mxu1  ;;  %v1740_v57 = vpop.f32.mrf.mxu0 }
 0x136   : > { %v1372_v53 = vadd.f32 %v1371_v52, %v1207_v20  ;;  %v1805_v55 = vadd.f32 %v3995_v30, %v1380_v50 }
 0x137   : > { %v3978_v54 = vpop.f32.mrf.mxu1  ;;  %v3996_v62 = vpop.f32.mrf.mxu0 }
 0x138   : > { %v1383_v56 = vadd.f32 %v3978_v54, %v3960_v38  ;;  %v1803_v51 = vadd.f32 %v1740_v57, %v1372_v53 }
 0x139   : > { %v1374_v58 = vpop.f32.mrf.mxu1  ;;  %v1743_v2 = vpop.f32.mrf.mxu0 }
 0x13a   : > { %v1375_v60 = vadd.f32 %v1374_v58, %v1210_v40  ;;  %v1806_v0 = vadd.f32 %v3996_v62, %v1383_v56 }
 0x13b   : > { %v3981_v63 = vpop.f32.mrf.mxu1 }
 0x13c   : > { %v1396_v1 = vadd.f32 %v3981_v63, %v3963_v48  ;;  %v1804_v4 = vadd.f32 %v1743_v2, %v1375_v60 }
 0x13d   : > { %v1387_v3 = vpop.f32.mrf.mxu1 }
 0x13e   : > { %v1388_v5 = vadd.f32 %v1387_v3, %v1223_v43 }
 0x13f   : > { %v3982_v7 = vpop.f32.mrf.mxu1  ;;  %v3999_v9 = vpop.f32.mrf.mxu0 }
 0x140   : > { %v1399_v8 = vadd.f32 %v3982_v7, %v3964_v45  ;;  %v1809_v10 = vadd.f32 %v3999_v9, %v1396_v1 }
 0x141   : > { %v1390_v6 = vpop.f32.mrf.mxu1  ;;  %v1756_v31 = vpop.f32.mrf.mxu0 }
 0x142   : > { %v1391_v12 = vadd.f32 %v1390_v6, %v1226_v47  ;;  %v1807_v14 = vadd.f32 %v1756_v31, %v1388_v5 }
 0x143   : > { %v3985_v13 = vpop.f32.mrf.mxu1  ;;  %v4000_v15 = vpop.f32.mrf.mxu0 }
 0x144   : > { %v1412_v59 = vadd.f32 %v3985_v13, %v3967_v37  ;;  %v1810_v17 = vadd.f32 %v4000_v15, %v1399_v8 }
 0x145   : > { %v1403_v16 = vpop.f32.mrf.mxu1  ;;  %v1759_v11 = vpop.f32.mrf.mxu0 }
 0x146   : > { %v1404_v18 = vadd.f32 %v1403_v16, %v1239_v61  ;;  %v1808_v21 = vadd.f32 %v1759_v11, %v1391_v12 }
 0x147   : > { %v3986_v19 = vpop.f32.mrf.mxu1  ;;  %v4003_v23 = vpop.f32.mrf.mxu0 }
 0x148   : > { %v1415_v22 = vadd.f32 %v3986_v19, %v3968_v39  ;;  %v1813_v25 = vadd.f32 %v4003_v23, %v1412_v59 }
 0x149   : > { %v1406_v24 = vpop.f32.mrf.mxu1  ;;  %v1772_v29 = vpop.f32.mrf.mxu0 }
 0x14a   : > { %v1407_v28 = vadd.f32 %v1406_v24, %v1242_v41  ;;  %v1811_v32 = vadd.f32 %v1772_v29, %v1404_v18 }
 0x14b   : > { %v3989_v27 = vpop.f32.mrf.mxu1  ;;  %v4004_v34 = vpop.f32.mrf.mxu0 }
 0x14c   : > { %v1428_v33 = vadd.f32 %v3989_v27, %v3971_v42  ;;  %v1814_v36 = vadd.f32 %v4004_v34, %v1415_v22 }
 0x14d   : > { %v1419_v35 = vpop.f32.mrf.mxu1  ;;  %v1775_v20 = vpop.f32.mrf.mxu0 }
 0x14e   : > { %v1420_v37 = vadd.f32 %v1419_v35, %v1255_v44  ;;  %v1812_v40 = vadd.f32 %v1775_v20, %v1407_v28 }
 0x14f   : > { %v3990_v38 = vpop.f32.mrf.mxu1  ;;  %v4007_v48 = vpop.f32.mrf.mxu0 }
 0x150   : > { %v1431_v61 = vadd.f32 %v3990_v38, %v3972_v26  ;;  %v5084_v45 = vadd.f32 %v4007_v48, %v1428_v33 }
 0x151   : > { %v1422_v43 = vpop.f32.mrf.mxu1  ;;  %v1788_v47 = vpop.f32.mrf.mxu0 }
 0x152   : > { %v1423_v39 = vadd.f32 %v1422_v43, %v1258_v46  ;;  %v5086_v41 = vadd.f32 %v1788_v47, %v1420_v37 }
 0x153   : > { %v4013_v49 = vpop.f32.mrf.mxu1  ;;  %v4008_v52 = vpop.f32.mrf.mxu0 }
 0x154   : > { %v2006_v50 = vadd.f32 %v4013_v49, %v1805_v55  ;;  %v5088_v53 = vadd.f32 %v4008_v52, %v1431_v61 }
 0x155   : > { %v1941_v42 = vpop.f32.mrf.mxu1  ;;  %v1791_v44 = vpop.f32.mrf.mxu0 }
 0x156   : > { %v2004_v30 = vadd.f32 %v1941_v42, %v1803_v51  ;;  %v5090_v56 = vadd.f32 %v1791_v44, %v1423_v39 }
 0x157   : > { %v4014_v54 = vpop.f32.mrf.mxu1  ;;  %v4031_v57 = vpop.f32.mrf.mxu0 }
 0x158   : > { %v2007_v26 = vadd.f32 %v4014_v54, %v1806_v0  ;;  %v5092_v60 = vadd.f32 %v4031_v57, %v2006_v50 }
 0x159   : > { %v1944_v58 = vpop.f32.mrf.mxu1  ;;  %v2142_v62 = vpop.f32.mrf.mxu0 }
 0x15a   : > { %v2005_v46 = vadd.f32 %v1944_v58, %v1804_v4  ;;  %v5094_v1 = vadd.f32 %v2142_v62, %v2004_v30 }
 0x15b   : > { %v4017_v63 = vpop.f32.mrf.mxu1  ;;  %v4032_v2 = vpop.f32.mrf.mxu0 }
 0x15c   : > { %v2010_v55 = vadd.f32 %v4017_v63, %v1809_v10  ;;  %v5096_v5 = vadd.f32 %v4032_v2, %v2007_v26 }
 0x15d   : > { %v1957_v3 = vpop.f32.mrf.mxu1  ;;  %v2145_v7 = vpop.f32.mrf.mxu0 }
 0x15e   : > { %v2008_v51 = vadd.f32 %v1957_v3, %v1807_v14  ;;  %v5098_v9 = vadd.f32 %v2145_v7, %v2005_v46 }
 0x15f   : > { %v4018_v8 = vpop.f32.mrf.mxu1  ;;  %v4035_v6 = vpop.f32.mrf.mxu0 }
 0x160   : > { %v2011_v0 = vadd.f32 %v4018_v8, %v1810_v17  ;;  %v5100_v31 = vadd.f32 %v4035_v6, %v2010_v55 }
 0x161   : > { %v1960_v12 = vpop.f32.mrf.mxu1  ;;  %v2158_v13 = vpop.f32.mrf.mxu0 }
 0x162   : > { %v2009_v4 = vadd.f32 %v1960_v12, %v1808_v21  ;;  %v5102_v15 = vadd.f32 %v2158_v13, %v2008_v51 }
 0x163   : > { %v4021_v59 = vpop.f32.mrf.mxu1  ;;  %v4036_v16 = vpop.f32.mrf.mxu0 }
 0x164   : > { %v2014_v10 = vadd.f32 %v4021_v59, %v1813_v25  ;;  %v5104_v11 = vadd.f32 %v4036_v16, %v2011_v0 }
 0x165   : > { %v1973_v18 = vpop.f32.mrf.mxu1  ;;  %v2161_v19 = vpop.f32.mrf.mxu0 }
 0x166   : > { %v2012_v14 = vadd.f32 %v1973_v18, %v1811_v32  ;;  %v5106_v23 = vadd.f32 %v2161_v19, %v2009_v4 }
 0x167   : > { %v4022_v22 = vpop.f32.mrf.mxu1  ;;  %v4039_v24 = vpop.f32.mrf.mxu0 }
 0x168   : > { %v2015_v17 = vadd.f32 %v4022_v22, %v1814_v36  ;;  %v5108_v29 = vadd.f32 %v4039_v24, %v2014_v10 }
 0x169   : > { %v1976_v28 = vpop.f32.mrf.mxu1  ;;  %v2174_v27 = vpop.f32.mrf.mxu0 }
 0x16a   : > { %v2013_v21 = vadd.f32 %v1976_v28, %v1812_v40  ;;  %v5112_v34 = vadd.f32 %v2174_v27, %v2012_v14 }
 0x16b   : > { %v5110_v33 = vpop.f32.mrf.mxu1  ;;  %v4040_v25 = vpop.f32.mrf.mxu0 }
 0x16c   : > { %v5116_v37 = vadd.f32 %v4040_v25, %v2015_v17 }
 0x16d   : > { %v5114_v35 = vpop.f32.mrf.mxu1  ;;  %v2177_v32 = vpop.f32.mrf.mxu0 }
 0x16e   : > { %v5120_v38 = vadd.f32 %v2177_v32, %v2013_v21 }
 0x16f   : > { %v5118_v20 = vpop.f32.mrf.mxu1  ;;  %v5122_v36 = vpop.f32.mrf.mxu0 }
 0x171   : > { %v5124_v61 = vpop.f32.mrf.mxu1  ;;  %v5126_v40 = vpop.f32.mrf.mxu0 }
 0x173   : > { %v4049_v48 = vpop.f32.mrf.mxu1  ;;  %v5128_v43 = vpop.f32.mrf.mxu0 }
 0x174   : > { %v2589_v10 = vadd.f32 %v4049_v48, %v5092_v60 }
 0x175   : > { %v2524_v39 = vpop.f32.mrf.mxu1  ;;  %v5130_v47 = vpop.f32.mrf.mxu0 }
 0x176   : > { %v2587_v14 = vadd.f32 %v2524_v39, %v5094_v1 }
 0x177   : > { %v4050_v49 = vpop.f32.mrf.mxu1  ;;  %v4067_v50 = vpop.f32.mrf.mxu0 }
 0x178   : > { %v2791_v17 = vadd.f32 %v4067_v50, %v2589_v10  ;;  %v2590_v24 = vadd.f32 %v4050_v49, %v5096_v5 }
 0x179   : > { %v2527_v52 = vpop.f32.mrf.mxu1  ;;  %v2726_v42 = vpop.f32.mrf.mxu0 }
 0x17a   : > { %v2789_v27 = vadd.f32 %v2726_v42, %v2587_v14  ;;  %v2588_v25 = vadd.f32 %v2527_v52, %v5098_v9 }
 0x17b   : > { %v4053_v30 = vpop.f32.mrf.mxu1  ;;  %v4068_v44 = vpop.f32.mrf.mxu0 }
 0x17d   : > { %v2540_v54 = vpop.f32.mrf.mxu1  ;;  %v2729_v26 = vpop.f32.mrf.mxu0 }
 0x17e   : > { %v2591_v50 = vadd.f32 %v2540_v54, %v5102_v15 }
 0x17f   : > { %v4054_v57 = vpop.f32.mrf.mxu1  ;;  %v4071_v58 = vpop.f32.mrf.mxu0 }
 0x180   : > { %v2594_v9 = vadd.f32 %v4054_v57, %v5104_v11  ;;  %v2018_v11 = vadd.f32 %v5110_v33, %v5084_v45  ;;  %v2019_v33 = vadd.f32 %v5118_v20, %v5088_v53 }
 0x181   : > { %v2543_v46 = vpop.f32.mrf.mxu1  ;;  %v2742_v62 = vpop.f32.mrf.mxu0 }
 0x182   : > { %v2219_v45 = vadd.f32 %v5122_v36, %v2018_v11 }
 0x183   : > { %v4057_v63 = vpop.f32.mrf.mxu1  ;;  %v4072_v55 = vpop.f32.mrf.mxu0 }
 0x185   : > { %v2556_v2 = vpop.f32.mrf.mxu1  ;;  %v2745_v3 = vpop.f32.mrf.mxu0 }
 0x187   : > { %v4058_v51 = vpop.f32.mrf.mxu1  ;;  %v4075_v7 = vpop.f32.mrf.mxu0 }
 0x189   : > { %v5132_v8 = vpop.f32.mrf.mxu1  ;;  %v5134_v0 = vpop.f32.mrf.mxu0 }
 0x18b   : > { %v5136_v6 = vpop.f32.mrf.mxu1  ;;  %v5138_v12 = vpop.f32.mrf.mxu0 }
 0x18c   : > { %v2601_v53 = vadd.f32 %v5136_v6, %v2219_v45 }
 0x18d   : > { %v5140_v4 = vpop.f32.mrf.mxu1  ;;  %v5142_v13 = vpop.f32.mrf.mxu0 }
 0x18f   : > { %v5144_v59 = vpop.f32.mrf.mxu1  ;;  %v5147_v16 = vpop.f32.mrf.mxu0 }
 0x190   : > { %5296 = vst [vmem:[#allocation6_spill] sm:$0xff] %v5144_v59  ;;  %5297 = vst [vmem:[#allocation7_spill] sm:$0xff] %v5147_v16  ;;  %v2792_v59 = vadd.f32 %v4068_v44, %v2590_v24  ;;  %v2790_v16 = vadd.f32 %v2729_v26, %v2588_v25 }
 0x191   : > { %v5149_v18 = vpop.f32.mrf.mxu1  ;;  %v5152_v19 = vpop.f32.mrf.mxu0 }
 0x192   : > { %5298 = vst [vmem:[#allocation8_spill] sm:$0xff] %v5149_v18  ;;  %5299 = vst [vmem:[#allocation9_spill] sm:$0xff] %v5152_v19  ;;  %v2593_v18 = vadd.f32 %v4053_v30, %v5100_v31  ;;  %v2793_v31 = vadd.f32 %v2742_v62, %v2591_v50  ;;  %v2592_v30 = vadd.f32 %v2543_v46, %v5106_v23 }
 0x193   : > { %v4085_v22 = vpop.f32.mrf.mxu1  ;;  %v5155_v28 = vpop.f32.mrf.mxu0  ;;  %v2595_v62 = vadd.f32 %v2556_v2, %v5112_v34 }
 0x194   : > { %v2992_v32 = vadd.f32 %v4085_v22, %v2791_v17  ;;  %v2795_v14 = vadd.f32 %v4071_v58, %v2593_v18  ;;  %v2794_v18 = vadd.f32 %v2745_v3, %v2592_v30 }
 0x195   : > { %v2927_v21 = vpop.f32.mrf.mxu1  ;;  %v5158_v60 = vpop.f32.mrf.mxu0  ;;  %v2797_v3 = vadd.f32 %v5134_v0, %v2595_v62  ;;  %v2220_v0 = vadd.f32 %v5128_v43, %v2019_v33 }
 0x196   : > { %v2990_v1 = vadd.f32 %v2927_v21, %v2789_v27  ;;  %v2796_v21 = vadd.f32 %v4072_v55, %v2594_v9 }
 0x197   : > { %v4086_v48 = vpop.f32.mrf.mxu1  ;;  %v4103_v39 = vpop.f32.mrf.mxu0  ;;  %v5301_v6 = vld [vmem:[#allocation6_spill] sm:$0xff] }
 0x198   : > { %v5162_v5 = vadd.f32 %v4103_v39, %v2992_v32  ;;  %v2993_v49 = vadd.f32 %v4086_v48, %v2792_v59  ;;  %v2597_v59 = vadd.f32 %v4057_v63, %v5108_v29  ;;  %v2598_v63 = vadd.f32 %v4058_v51, %v5116_v37 }
 0x199   : > { %v2930_v19 = vpop.f32.mrf.mxu1  ;;  %v3309_v10 = vpop.f32.mrf.mxu0  ;;  %v2017_v51 = vadd.f32 %v5124_v61, %v5090_v56  ;;  %v5302_v30 = vld [vmem:[#allocation9_spill] sm:$0xff] }
 0x19a   : > { %v5165_v52 = vadd.f32 %v3309_v10, %v2990_v1  ;;  %v2991_v22 = vadd.f32 %v2930_v19, %v2790_v16  ;;  %v2016_v19 = vadd.f32 %v5114_v35, %v5086_v41  ;;  %v2799_v29 = vadd.f32 %v4075_v7, %v2597_v59 }
 0x19b   : > { %v4089_v42 = vpop.f32.mrf.mxu1  ;;  %v4104_v44 = vpop.f32.mrf.mxu0  ;;  %v2596_v41 = vadd.f32 %v5132_v8, %v5120_v38  ;;  %v2800_v39 = vadd.f32 %v5138_v12, %v2598_v63  ;;  %v2218_v56 = vadd.f32 %v5130_v47, %v2017_v51  ;;  %v5300_v12 = vld [vmem:[#allocation7_spill] sm:$0xff] }
 0x19c   : > { %v5168_v24 = vadd.f32 %v4104_v44, %v2993_v49  ;;  %v2996_v26 = vadd.f32 %v4089_v42, %v2795_v14  ;;  %v2217_v37 = vadd.f32 %v5126_v40, %v2016_v19  ;;  %v2803_v9 = vadd.f32 %v5300_v12, %v2601_v53 }
 0x19d   : > { %v2943_v17 = vpop.f32.mrf.mxu1  ;;  %v3312_v15 = vpop.f32.mrf.mxu0  ;;  %v2798_v8 = vadd.f32 %v5142_v13, %v2596_v41  ;;  %v5303_v13 = vld [vmem:[#allocation8_spill] sm:$0xff] }
 0x19e   : > { %v5171_v27 = vadd.f32 %v3312_v15, %v2991_v22  ;;  %v2994_v58 = vadd.f32 %v2943_v17, %v2793_v31  ;;  %v2599_v10 = vadd.f32 %v5140_v4, %v2217_v37  ;;  %v2602_v22 = vadd.f32 %v5301_v6, %v2220_v0 }
 0x19f   : > { %v4090_v54 = vpop.f32.mrf.mxu1  ;;  %v4107_v57 = vpop.f32.mrf.mxu0  ;;  %v2600_v15 = vadd.f32 %v5303_v13, %v2218_v56 }
 0x1a0   : > { %v5176_v23 = vadd.f32 %v4107_v57, %v2996_v26  ;;  %v2997_v46 = vadd.f32 %v4090_v54, %v2796_v21  ;;  %v2801_v26 = vadd.f32 %v5302_v30, %v2599_v10  ;;  %v2804_v47 = vadd.f32 %v5155_v28, %v2602_v22 }
 0x1a1   : > { %v2946_v16 = vpop.f32.mrf.mxu1  ;;  %v3325_v55 = vpop.f32.mrf.mxu0 }
 0x1a2   : > { %v5181_v32 = vadd.f32 %v3325_v55, %v2994_v58  ;;  %v2995_v48 = vadd.f32 %v2946_v16, %v2794_v18  ;;  %v2802_v18 = vadd.f32 %v5158_v60, %v2600_v15 }
 0x1a3   : > { %v4093_v25 = vpop.f32.mrf.mxu1  ;;  %v4108_v34 = vpop.f32.mrf.mxu0 }
 0x1a4   : > { %v5189_v35 = vadd.f32 %v4108_v34, %v2997_v46  ;;  %v3000_v7 = vadd.f32 %v4093_v25, %v2799_v29 }
 0x1a5   : > { %v2959_v2 = vpop.f32.mrf.mxu1  ;;  %v3328_v1 = vpop.f32.mrf.mxu0 }
 0x1a6   : > { %v3377_v20 = vadd.f32 %v3328_v1, %v2995_v48  ;;  %v2998_v50 = vadd.f32 %v2959_v2, %v2797_v3 }
 0x1a7   : > { %v4094_v36 = vpop.f32.mrf.mxu1  ;;  %v4111_v49 = vpop.f32.mrf.mxu0 }
 0x1a8   : > { %v5199_v40 = vadd.f32 %v4111_v49, %v3000_v7  ;;  %v3001_v42 = vadd.f32 %v4094_v36, %v2800_v39 }
 0x1a9   : > { %v2962_v38 = vpop.f32.mrf.mxu1  ;;  %v3341_v61 = vpop.f32.mrf.mxu0 }
 0x1aa   : > { %v3380_v44 = vadd.f32 %v3341_v61, %v2998_v50  ;;  %v2999_v17 = vadd.f32 %v2962_v38, %v2798_v8 }
 0x1ab   : > { %v4097_v14 = vpop.f32.mrf.mxu1  ;;  %v4112_v43 = vpop.f32.mrf.mxu0 }
 0x1ac   : > { %v3383_v4 = vadd.f32 %v4112_v43, %v3001_v42  ;;  %v3004_v54 = vadd.f32 %v4097_v14, %v2803_v9 }
 0x1ad   : > { %v2975_v31 = vpop.f32.mrf.mxu1  ;;  %v3344_v21 = vpop.f32.mrf.mxu0 }
 0x1ae   : > { %v3381_v58 = vadd.f32 %v3344_v21, %v2999_v17  ;;  %v3002_v11 = vadd.f32 %v2975_v31, %v2801_v26 }
 0x1af   : > { %v4098_v59 = vpop.f32.mrf.mxu1  ;;  %v4115_v57 = vpop.f32.mrf.mxu0 }
 0x1b0   : > { %v3386_v62 = vadd.f32 %v4115_v57, %v3004_v54  ;;  %v3005_v46 = vadd.f32 %v4098_v59, %v2804_v47 }
 0x1b1   : > { %v2978_v16 = vpop.f32.mrf.mxu1  ;;  %v3357_v19 = vpop.f32.mrf.mxu0 }
 0x1b2   : > { %v3384_v55 = vadd.f32 %v3357_v19, %v3002_v11  ;;  %v3003_v25 = vadd.f32 %v2978_v16, %v2802_v18  ;;  %3391 = sbr.rel (%p3868_p1) target bundleno = 441 (0x1b9), region = 73 }
 0x1b3   : > { %v4116_v29 = vpop.f32.mrf.mxu0 }
 0x1b4   : > { %v3387_v63 = vadd.f32 %v4116_v29, %v3005_v46 }
 0x1b5   : > { %v3360_v48 = vpop.f32.mrf.mxu0 }
 0x1b6   : > { %v3385_v45 = vadd.f32 %v3360_v48, %v3003_v25 }
 0x1b7   : > { %v4338_v28 = vmov 0.0  }
 0x1b8   : > { %3392 = vst [vmem:[%s5210_s30] sm:$0x3] %v4338_v28 }
 0x1b9 PF: > { %v3394_v60 = vadd.f32 %v5171_v27, %v5165_v52  ;;  %v3418_v33 = vmul.f32 %v5165_v52, %v5165_v52  ;;  %v3419_v34 = vmul.f32 %v5171_v27, %v5171_v27  ;;  %v3420_v3 = vmul.f32 %v5162_v5, %v5162_v5  ;;  %s3870_s12 = sshll.u32 %s4323_s13, 5  ;;  %s3471_s18 = sshll.u32 %s5210_s30, 4  ;;  %s3472_s18 = int_to_ptr.vmem [resolvable:$true] %s3471_s18 }
 0x1ba   : > { %v3421_v7 = vmul.f32 %v5168_v24, %v5168_v24  ;;  %v3422_v1 = vmul.f32 %v5181_v32, %v5181_v32  ;;  %v3423_v39 = vmul.f32 %v3377_v20, %v3377_v20  ;;  %v3426_v8 = vmul.f32 %v3380_v44, %v3380_v44  ;;  %s3469_s5 = scalar_lea.hbm %s5290_s2, %s3870_s12  ;;  %s3458_s6 = scalar_lea.sflag [#allocation4], %s4661_s8 }
 0x1bb   : > { %v3395_v2 = vadd.f32 %v3394_v60, %v5162_v5  ;;  %v3434_v37 = vadd.f32 %v3419_v34, %v3418_v33  ;;  %v3424_v5 = vmul.f32 %v5176_v23, %v5176_v23  ;;  %v3427_v42 = vmul.f32 %v3381_v58, %v3381_v58  ;;  %s4243_s7 = scalar_lea.vmem %s3472_s18, 32  ;;  %s4339_s17 = smov [#allocation3]  }
 0x1bc   : > { %v3428_v61 = vmul.f32 %v5199_v40, %v5199_v40  ;;  %v3429_v12 = vmul.f32 %v3383_v4, %v3383_v4  ;;  %v3430_v22 = vmul.f32 %v3384_v55, %v3384_v55  ;;  %v3431_v43 = vmul.f32 %v3385_v45, %v3385_v45  ;;  %p4244_p2 = scmp.ne.s32.totalorder %s3472_s18, %s4243_s7  ;;  %s4247_s21 = sshll.u32 %s4339_s17, 4  ;;  %s4248_s21 = int_to_ptr.vmem [resolvable:$false] %s4247_s21 }
 0x1bd   : > { %v3396_v41 = vadd.f32 %v3395_v2, %v5168_v24  ;;  %v3435_v52 = vadd.f32 %v3434_v37, %v3420_v3  ;;  %v3425_v24 = vmul.f32 %v5189_v35, %v5189_v35  ;;  %v3432_v30 = vmul.f32 %v3386_v62, %v3386_v62  ;;  %s4249_s13 = scalar_lea.vmem %s4248_s21, 64  ;;  %p4250_p5 = scmp.lt.s32.totalorder %s3472_s18, %s4248_s21 }
 0x1be   : > { %v3433_v15 = vmul.f32 %v3387_v63, %v3387_v63  ;;  %p4245_p3 = pnand %p4244_p2, %p4411_p7  ;;  %p4251_p6 = scmp.lt.s32.totalorder %s4249_s13, %s4243_s7 }
 0x1bf   : > { %v3397_v51 = vadd.f32 %v3396_v41, %v5181_v32  ;;  %v3436_v27 = vadd.f32 %v3435_v52, %v3421_v7  ;;  %v3417_v29 = vld [vmem:[%s5210_s30 + $0x1] sm:$0x1] }
 0x1c0   : > { %p4246_p4 = pneg %p4245_p3  ;;  %p4252_p8 = por %p4251_p6, %p4250_p5 }
 0x1c1   : > { %v3398_v36 = vadd.f32 %v3397_v51, %v3377_v20  ;;  %v3437_v50 = vadd.f32 %v3436_v27, %v3422_v1 }
 0x1c2   : > { %p4253_p10 = pnand %p4252_p8, %p4246_p4 }
 0x1c3   : > { %v3399_v53 = vadd.f32 %v3398_v36, %v5176_v23  ;;  %v3438_v49 = vadd.f32 %v3437_v50, %v3423_v39 }
 0x1c5   : > { %v3400_v0 = vadd.f32 %v3399_v53, %v5189_v35  ;;  %v3439_v10 = vadd.f32 %v3438_v49, %v3424_v5 }
 0x1c7   : > { %v3401_v38 = vadd.f32 %v3400_v0, %v3380_v44  ;;  %v3440_v56 = vadd.f32 %v3439_v10, %v3425_v24 }
 0x1c9   : > { %v3402_v32 = vadd.f32 %v3401_v38, %v3381_v58  ;;  %v3441_v14 = vadd.f32 %v3440_v56, %v3426_v8 }
 0x1cb   : > { %v3403_v20 = vadd.f32 %v3402_v32, %v5199_v40  ;;  %v3442_v9 = vadd.f32 %v3441_v14, %v3427_v42 }
 0x1cd   : > { %v3404_v23 = vadd.f32 %v3403_v20, %v3383_v4  ;;  %v3443_v17 = vadd.f32 %v3442_v9, %v3428_v61 }
 0x1cf   : > { %v3405_v6 = vadd.f32 %v3404_v23, %v3384_v55  ;;  %v3444_v31 = vadd.f32 %v3443_v17, %v3429_v12 }
 0x1d1   : > { %v3406_v35 = vadd.f32 %v3405_v6, %v3385_v45  ;;  %v3445_v26 = vadd.f32 %v3444_v31, %v3430_v22 }
 0x1d3   : > { %v3407_v44 = vadd.f32 %v3406_v35, %v3386_v62  ;;  %v3446_v54 = vadd.f32 %v3445_v26, %v3431_v43  ;;  %v3393_v62 = vld [vmem:[%s5210_s30] sm:$0x1] }
 0x1d5   : > { %v3408_v13 = vadd.f32 %v3407_v44, %v3387_v63  ;;  %v3447_v40 = vadd.f32 %v3446_v54, %v3432_v30 }
 0x1d7   : > { %v3409_v21 = vrot.slane %v3408_v13, 4  ;;  %v3448_v59 = vadd.f32 %v3447_v40, %v3433_v15 }
 0x1d9   : > { %v3410_v4 = vadd.f32 %v3409_v21, %v3408_v13  ;;  %v3449_v58 = vrot.slane %v3448_v59, 4 }
 0x1db   : > { %v3411_v47 = vrot.slane %v3410_v4, 2  ;;  %v3450_v57 = vadd.f32 %v3449_v58, %v3448_v59 }
 0x1dd   : > { %v3412_v11 = vadd.f32 %v3411_v47, %v3410_v4  ;;  %v3451_v18 = vrot.slane %v3450_v57, 2 }
 0x1df   : > { %v3413_v16 = vrot.slane %v3412_v11, 1  ;;  %v3452_v19 = vadd.f32 %v3451_v18, %v3450_v57 }
 0x1e1   : > { %v3414_v46 = vadd.f32 %v3413_v16, %v3412_v11  ;;  %v3453_v25 = vrot.slane %v3452_v19, 1 }
 0x1e3   : > { %v3415_v55 = vadd.f32 %v3414_v46, %v3393_v62  ;;  %v3454_v63 = vadd.f32 %v3453_v25, %v3452_v19 }
 0x1e5   : > { %3416 = vst [vmem:[%s5210_s30] sm:$0x1] %v3415_v55  ;;  %v3455_v48 = vadd.f32 %v3454_v63, %v3417_v29 }
 0x1e7   : > { %3456 = vst [vmem:[%s5210_s30 + $0x1] sm:$0x1] %v3455_v48 }
 0x1e8   : > { %4256 = shalt.err (!%p4253_p10)
}
 0x1e9   : > { %s4257_s24 = scalar_lea.hbm %s3469_s5, 32  ;;  %s4261_s27 = scalar_lea.hbm %s5290_s2, 64 }
 0x1ea   : > { %p4258_p11 = scmp.ne.s32.totalorder %s3469_s5, %s4257_s24  ;;  %p4262_p0 = scmp.lt.s32.totalorder %s3469_s5, %s5290_s2 }
 0x1eb   : > { %p4263_p1 = scmp.lt.s32.totalorder %s4261_s27, %s4257_s24 }
 0x1ec   : > { %p4259_p12 = pnand %p4258_p11, %p4411_p7 }
 0x1ed   : > { %p4264_p2 = por %p4263_p1, %p4262_p0 }
 0x1ee   : > { %p4260_p13 = pneg %p4259_p12 }
 0x1f0   : > { %p4265_p3 = pnand %p4264_p2, %p4260_p13 }
 0x1f2   : > { %4268 = shalt.err (!%p4265_p3)
}
 0x1f3   : > { %4122 = dma.vmem_to_hbm [thread:$0]  (%p4411_p7), %s3472_s18, 32, %s3469_s5, %s3458_s6  }
 0x1f4 PF: > { %p4128_p4 = scmp.ge.s32.totalorder %s4335_s16, 2  ;;  %s3483_s30 = sand.u32 1, %s4307_s9  }
 0x1f5   : > { %s3484_s12 = scalar_lea.sflag [#allocation4], %s3483_s30 }
 0x1f6   : > { %p4125_p5 = pnand %p4128_p4, %p4417_p9 }
 0x1f8   : > { %p4126_p6 = pneg %p4125_p5 }
 0x1fa   : > { %4302 = dma.done.wait (%p4126_p6), %s3484_s12, 32  }
 0x1fb   : > { %4304 = vsyncadd (%p4126_p6), %s3484_s12, 4294967264  ;;  %s15_s16 = sadd.s32 1, %s4335_s16   ;;  %s5304_s9 = smov %s4311_s10 }
 0x1fc   : > { %p12_p8 = scmp.ge.s32.totalorder %s15_s16, 6   ;;  %s5305_s10 = smov %s4315_s11 }
 0x1fd   : > { %s5306_s11 = smov %s4425_s26  ;;  %s5307_s12 = smov %s4327_s14 }
 0x1fe   : > { %s5308_s13 = smov %s4331_s15  ;;  %s5309_s14 = smov %s5312_s19 }
 0x1ff   : > { %s5310_s15 = smov %s5316_s20  ;;  %14 = sbr.rel (!%p12_p8) target bundleno = 5 (0x5), region = 127 }
 0x204   :  { %3489 = vsyncpa [#allocation4], 1 }
 0x205   :  { %3491 = vsyncpa [#allocation4 + $0x1], 1 }

</bundles_post_ra>
